<compile_context>
chip_gen: v7x
topology: tpu7x:2x2x1
jax: 0.10.0
libtpu: 0.0.40
codegen_flags: <defaults>
</compile_context>

<pallas_src>
import jax
import jax.numpy as jnp
from jax.experimental import pallas as pl
from jax.experimental.pallas import tpu as pltpu

# ---------------- configuration (small synthetic shapes) ----------------
B = 2     # batch
SF = 6    # static_feats_num
IF = 5    # intervention_feats_num
VF = 3    # vital_feats_num
T = 8     # sequence length (time axis of dynamic / fourier inputs)
H = 32    # hidden_dim
O = 4     # out_dim
TB = T * B


def retain_kernel(
    xs_ref,      # (B, SF)       static features
    xd_ref,      # (T*B, IF)     intervention features, rows ordered (t, b)
    fre_ref,     # (T*B, VF)     Re(fourier_coeffs), rows ordered (freq, b)
    fim_ref,     # (T*B, VF)     Im(fourier_coeffs)
    cos_ref,     # (T*B, T*B)    kron(IDFT cos basis / T, I_B)
    sin_ref,     # (T*B, T*B)    kron(IDFT sin basis / T, I_B)
    wd1_ref,     # (IF, H)       dynamic projection (intervention half)
    wd2_ref,     # (VF, H)       dynamic projection (vitals half)
    bd_ref,      # (1, H)
    ws_ref,      # (SF, H)       static projection
    bs_ref,      # (1, H)
    wih_ref,     # (H, 6H)       fused GRU input gates, cols [r_a r_b z_a z_b n_a n_b]
    bih_ref,     # (1, 6H)
    whh_ref,     # (2H, 6H)      fused GRU hidden gates (block-diag over alpha/beta)
    bhh_ref,     # (1, 6H)
    wab_ref,     # (2H, H+1)     fused attention: cols [beta_pre (wbl) | logit (wal)]
    bab_ref,     # (1, H+1)
    r_ref,       # (B, T*B)      per-batch time-sum selection matrix
    wh1_ref,     # (H, O)        head (static half)
    wh2_ref,     # (H, O)        head (retain half)
    bh_ref,      # (1, O)
    out_ref,     # (B, O)
    states_ref,  # scratch (T*B, 2H)   stacked [alpha_state | beta_state]
):
    f32 = jnp.float32

    # --- torch.fft.ifft(...).real for the whole batch: two matmuls ---
    vit = (jnp.dot(cos_ref[...], fre_ref[...], preferred_element_type=f32)
           - jnp.dot(sin_ref[...], fim_ref[...], preferred_element_type=f32))   # (T*B, VF)

    # --- projections (feature concat expressed as split matmuls) ---
    x_proj = (jnp.dot(xd_ref[...], wd1_ref[...], preferred_element_type=f32)
              + jnp.dot(vit, wd2_ref[...], preferred_element_type=f32)
              + bd_ref[...])                                                     # (T*B, H)
    h_static = (jnp.dot(xs_ref[...], ws_ref[...], preferred_element_type=f32)
                + bs_ref[...])                                                   # (B, H)

    # TODO(synk): dropout inside RETAINLayer omitted (inference mode).

    # fused input-gate projection for BOTH GRUs in one matmul
    gx = jnp.dot(x_proj, wih_ref[...], preferred_element_type=f32) + bih_ref[...]  # (T*B, 6H)

    whh = whh_ref[...]
    bhh = bhh_ref[...]
    h = jnp.zeros((B, 2 * H), f32)   # [alpha hidden | beta hidden]

    # Reversed-time recurrence; both GRUs fused into one dependent matmul per
    # step.  T is small (<= 16) so static unrolling is fine; for larger T use
    # lax.fori_loop writing into states_ref.
    for i in range(T):
        t = T - 1 - i
        gx_t = gx[t * B:(t + 1) * B, :]                                  # (B, 6H)
        gh = jnp.dot(h, whh, preferred_element_type=f32) + bhh          # (B, 6H)
        r = jax.nn.sigmoid(gx_t[:, 0:2 * H] + gh[:, 0:2 * H])
        z = jax.nn.sigmoid(gx_t[:, 2 * H:4 * H] + gh[:, 2 * H:4 * H])
        n = jnp.tanh(gx_t[:, 4 * H:6 * H] + r * gh[:, 4 * H:6 * H])
        h = (1.0 - z) * n + z * h
        # store at the ORIGINAL time index -> everything below is aligned
        # with x_proj in original time order (no serial context loop needed).
        states_ref[t * B:(t + 1) * B, :] = h

    states = states_ref[...]                                             # (T*B, 2H) = [g | hb]

    # fused attention projections: [g | hb] @ [[0, wal], [wbl, 0]] + [bbl | bal]
    att = jnp.dot(states, wab_ref[...], preferred_element_type=f32) + bab_ref[...]  # (T*B, H+1)
    beta = jnp.tanh(att[:, 0:H])                                         # (T*B, H)
    logits = att[:, H:H + 1]                                             # (T*B, 1)

    # per-batch softmax over time, fully vectorized: a single global max is a
    # valid (per-batch-invariant) stabilizer; the per-batch time sums are the
    # selection matmuls with R.
    w = jnp.exp(logits - jnp.max(logits, keepdims=True))                 # (T*B, 1)
    wu = w * beta * x_proj                                               # (T*B, H)
    num = jnp.dot(r_ref[...], wu, preferred_element_type=f32)            # (B, H)
    den = jnp.dot(r_ref[...], w, preferred_element_type=f32)             # (B, 1)
    c = num * pl.reciprocal(den, approx=True)                            # (B, H)

    out = (jnp.dot(h_static, wh1_ref[...], preferred_element_type=f32)
           + jnp.dot(c, wh2_ref[...], preferred_element_type=f32)
           + bh_ref[...])
    out_ref[...] = out.astype(out_ref.dtype)


# -------------------------- weight fusion glue --------------------------
def _fuse_gru_weights(p):
    def split3(w):
        return w[:, 0:H], w[:, H:2 * H], w[:, 2 * H:3 * H]

    ra, za, na = split3(p['wih_a']); rb, zb, nb = split3(p['wih_b'])
    wih_f = jnp.concatenate([ra, rb, za, zb, na, nb], axis=1)                 # (H, 6H)
    bra, bza, bna = split3(p['bih_a']); brb, bzb, bnb = split3(p['bih_b'])
    bih_f = jnp.concatenate([bra, brb, bza, bzb, bna, bnb], axis=1)           # (1, 6H)

    hra, hza, hna = split3(p['whh_a']); hrb, hzb, hnb = split3(p['whh_b'])
    zhh = jnp.zeros((H, H), jnp.float32)
    whh_f = jnp.concatenate([
        jnp.concatenate([hra, zhh, hza, zhh, hna, zhh], axis=1),  # alpha-state rows
        jnp.concatenate([zhh, hrb, zhh, hzb, zhh, hnb], axis=1),  # beta-state rows
    ], axis=0)                                                                # (2H, 6H)
    bhra, bhza, bhna = split3(p['bhh_a']); bhrb, bhzb, bhnb = split3(p['bhh_b'])
    bhh_f = jnp.concatenate([bhra, bhrb, bhza, bhzb, bhna, bhnb], axis=1)     # (1, 6H)

    wab = jnp.concatenate([
        jnp.concatenate([jnp.zeros((H, H), jnp.float32), p['wal']], axis=1),  # g rows
        jnp.concatenate([p['wbl'], jnp.zeros((H, 1), jnp.float32)], axis=1),  # hb rows
    ], axis=0)                                                                # (2H, H+1)
    bab = jnp.concatenate([p['bbl'], p['bal']], axis=1)                       # (1, H+1)
    return wih_f, bih_f, whh_f, bhh_f, wab, bab


# -------------------------- wrapper (glue) --------------------------
def retain_forward(x_static, x_dynamic, fourier_coeffs, params):
    # channel-major (B, feat, T) -> flat time/freq-major (T*B, feat), rows (t, b)
    def flat_tb(x):
        return jnp.transpose(x, (2, 0, 1)).reshape(T * B, x.shape[1])

    xd_flat = flat_tb(x_dynamic.astype(jnp.float32))
    fre_flat = flat_tb(jnp.real(fourier_coeffs).astype(jnp.float32))
    fim_flat = flat_tb(jnp.imag(fourier_coeffs).astype(jnp.float32))

    # real IDFT bases, expanded with kron(., I_B) to act on the (t, b)-flat layout
    n = jnp.arange(T, dtype=jnp.float32)
    ang = 2.0 * jnp.pi * jnp.outer(n, n) / T
    eye_b = jnp.eye(B, dtype=jnp.float32)
    cos_big = jnp.kron(jnp.cos(ang) / T, eye_b)      # (T*B, T*B)
    sin_big = jnp.kron(jnp.sin(ang) / T, eye_b)      # (T*B, T*B)

    wih_f, bih_f, whh_f, bhh_f, wab, bab = _fuse_gru_weights(params)
    r_sel = jnp.tile(eye_b, (1, T))                  # (B, T*B): per-batch sum over time

    inputs = (x_static.astype(jnp.float32), xd_flat, fre_flat, fim_flat,
              cos_big, sin_big,
              params['wd1'], params['wd2'], params['bd'],
              params['ws'], params['bs'],
              wih_f, bih_f, whh_f, bhh_f, wab, bab, r_sel,
              params['wh1'], params['wh2'], params['bh'])

    # The whole batch is folded into one grid step (one B-tile).  For large B,
    # tile the batch along this axis; it stays "parallel" so v7x can shard
    # B-tiles across its two TensorCores.  All arrays are 2-D and each block
    # equals the full array, so the (8,128) rule is trivially satisfied.
    in_specs = [pl.BlockSpec(x.shape, lambda i: (0, 0)) for x in inputs]

    out = pl.pallas_call(
        retain_kernel,
        out_shape=jax.ShapeDtypeStruct((B, O), jnp.float32),
        grid=(1,),
        in_specs=in_specs,
        out_specs=pl.BlockSpec((B, O), lambda i: (i, 0)),
        scratch_shapes=[pltpu.VMEM((T * B, 2 * H), jnp.float32)],
        compiler_params=pltpu.CompilerParams(dimension_semantics=("parallel",)),
    )(*inputs)
    return {'logits': out, 'reconstructed_vitals': None}


# ----------------------- deterministic parameters -----------------------
def init_params(key):
    ks = jax.random.split(key, 8)

    def lin(k, fan_in, fan_out):
        lim = 1.0 / jnp.sqrt(jnp.float32(fan_in))
        kw, kb = jax.random.split(k)
        w = jax.random.uniform(kw, (fan_in, fan_out), jnp.float32, -lim, lim)
        b = jax.random.uniform(kb, (1, fan_out), jnp.float32, -lim, lim)
        return w, b

    def gru(k, in_dim, hid):
        lim = 1.0 / jnp.sqrt(jnp.float32(hid))
        k1, k2, k3, k4 = jax.random.split(k, 4)
        wih = jax.random.uniform(k1, (in_dim, 3 * hid), jnp.float32, -lim, lim)
        whh = jax.random.uniform(k2, (hid, 3 * hid), jnp.float32, -lim, lim)
        bih = jax.random.uniform(k3, (1, 3 * hid), jnp.float32, -lim, lim)
        bhh = jax.random.uniform(k4, (1, 3 * hid), jnp.float32, -lim, lim)
        return wih, whh, bih, bhh

    wd, bd = lin(ks[0], IF + VF, H)
    ws, bs = lin(ks[1], SF, H)
    wih_a, whh_a, bih_a, bhh_a = gru(ks[2], H, H)
    wih_b, whh_b, bih_b, bhh_b = gru(ks[3], H, H)
    wal, bal = lin(ks[4], H, 1)
    wbl, bbl = lin(ks[5], H, H)
    wh, bh = lin(ks[6], 2 * H, O)
    return dict(
        wd1=wd[:IF], wd2=wd[IF:], bd=bd, ws=ws, bs=bs,
        wih_a=wih_a, whh_a=whh_a, bih_a=bih_a, bhh_a=bhh_a,
        wih_b=wih_b, whh_b=whh_b, bih_b=bih_b, bhh_b=bhh_b,
        wal=wal, bal=bal, wbl=wbl, bbl=bbl,
        wh1=wh[:H], wh2=wh[H:], bh=bh,
    )


# ------------------------- pure-JAX reference -------------------------
def reference_forward(x_static, x_dynamic, fourier_coeffs, p):
    x_vitals = jnp.real(jnp.fft.ifft(fourier_coeffs, axis=-1)).astype(jnp.float32)  # (B, VF, T)
    xdyn = jnp.concatenate([x_dynamic, x_vitals], axis=1)                           # (B, IF+VF, T)
    h_static = x_static @ p['ws'] + p['bs']
    wd = jnp.concatenate([p['wd1'], p['wd2']], axis=0)
    xp = jnp.swapaxes(xdyn, -1, -2) @ wd + p['bd']                                  # (B, T, H)
    rx = xp[:, ::-1, :]

    def gru(seq, wih, whh, bih, bhh):
        def step(h, x_t):
            gx = x_t @ wih + bih
            gh = h @ whh + bhh
            r = jax.nn.sigmoid(gx[:, :H] + gh[:, :H])
            z = jax.nn.sigmoid(gx[:, H:2 * H] + gh[:, H:2 * H])
            nn_ = jnp.tanh(gx[:, 2 * H:] + r * gh[:, 2 * H:])
            h = (1.0 - z) * nn_ + z * h
            return h, h
        h0 = jnp.zeros((seq.shape[0], H), jnp.float32)
        _, hs = jax.lax.scan(step, h0, jnp.swapaxes(seq, 0, 1))
        return jnp.swapaxes(hs, 0, 1)

    g = gru(rx, p['wih_a'], p['whh_a'], p['bih_a'], p['bhh_a'])
    hb = gru(rx, p['wih_b'], p['whh_b'], p['bih_b'], p['bhh_b'])
    alpha = jax.nn.softmax(g @ p['wal'] + p['bal'], axis=1)
    beta = jnp.tanh(hb @ p['wbl'] + p['bbl'])
    c = jnp.sum(alpha * beta * rx, axis=1)
    wh = jnp.concatenate([p['wh1'], p['wh2']], axis=0)
    return jnp.concatenate([h_static, c], axis=-1) @ wh + p['bh']


if __name__ == "__main__":
    key = jax.random.PRNGKey(0)
    k1, k2, k3, k4, kp = jax.random.split(key, 5)
    x_static = jax.random.normal(k1, (B, SF), jnp.float32)
    x_dynamic = jax.random.normal(k2, (B, IF, T), jnp.float32)
    fr = jax.random.normal(k3, (B, VF, T), jnp.float32)
    fi = jax.random.normal(k4, (B, VF, T), jnp.float32)
    fourier_coeffs = fr + 1j * fi  # complex64
    params = init_params(kp)

    out = retain_forward(x_static, x_dynamic, fourier_coeffs, params)
    logits = jax.block_until_ready(out['logits'])

    ref = reference_forward(x_static, x_dynamic, fourier_coeffs, params)
    assert logits.shape == (B, O)
    assert bool(jnp.all(jnp.isfinite(logits)))
    if not jnp.allclose(logits, ref, rtol=3e-2, atol=3e-2):
        raise AssertionError("Pallas kernel output mismatches reference")
    print("KERNEL_OK")
</pallas_src>

<mosaic_0001>
module attributes {stable_mosaic.version = 11 : i64} {
  func.func @retain_kernel(%arg0: i32, %arg1: memref<2x6xf32, #tpu.memory_space<vmem>>, %arg2: memref<16x5xf32, #tpu.memory_space<vmem>>, %arg3: memref<16x3xf32, #tpu.memory_space<vmem>>, %arg4: memref<16x3xf32, #tpu.memory_space<vmem>>, %arg5: memref<16x16xf32, #tpu.memory_space<vmem>>, %arg6: memref<16x16xf32, #tpu.memory_space<vmem>>, %arg7: memref<5x32xf32, #tpu.memory_space<vmem>>, %arg8: memref<3x32xf32, #tpu.memory_space<vmem>>, %arg9: memref<1x32xf32, #tpu.memory_space<vmem>>, %arg10: memref<6x32xf32, #tpu.memory_space<vmem>>, %arg11: memref<1x32xf32, #tpu.memory_space<vmem>>, %arg12: memref<32x192xf32, #tpu.memory_space<vmem>>, %arg13: memref<1x192xf32, #tpu.memory_space<vmem>>, %arg14: memref<64x192xf32, #tpu.memory_space<vmem>>, %arg15: memref<1x192xf32, #tpu.memory_space<vmem>>, %arg16: memref<64x33xf32, #tpu.memory_space<vmem>>, %arg17: memref<1x33xf32, #tpu.memory_space<vmem>>, %arg18: memref<2x16xf32, #tpu.memory_space<vmem>>, %arg19: memref<32x4xf32, #tpu.memory_space<vmem>>, %arg20: memref<32x4xf32, #tpu.memory_space<vmem>>, %arg21: memref<1x4xf32, #tpu.memory_space<vmem>>, %arg22: memref<2x4xf32, #tpu.memory_space<vmem>>, %arg23: memref<16x64xf32, #tpu.memory_space<vmem>>) attributes {dimension_semantics = [#tpu.dimension_semantics<parallel>], iteration_bounds = array<i64: 1>, scalar_prefetch = 0 : i64, scratch_operands = 1 : i64, tpu.core_type = #tpu.core_type<tc>, window_params = [{pipeline_mode = #tpu.pipeline_mode<synchronous>, transform_indices = @transform_0, window_bounds = array<i64: 2, 6>}, {pipeline_mode = #tpu.pipeline_mode<synchronous>, transform_indices = @transform_1, window_bounds = array<i64: 16, 5>}, {pipeline_mode = #tpu.pipeline_mode<synchronous>, transform_indices = @transform_2, window_bounds = array<i64: 16, 3>}, {pipeline_mode = #tpu.pipeline_mode<synchronous>, transform_indices = @transform_3, window_bounds = array<i64: 16, 3>}, {pipeline_mode = #tpu.pipeline_mode<synchronous>, transform_indices = @transform_4, window_bounds = array<i64: 16, 16>}, {pipeline_mode = #tpu.pipeline_mode<synchronous>, transform_indices = @transform_5, window_bounds = array<i64: 16, 16>}, {pipeline_mode = #tpu.pipeline_mode<synchronous>, transform_indices = @transform_6, window_bounds = array<i64: 5, 32>}, {pipeline_mode = #tpu.pipeline_mode<synchronous>, transform_indices = @transform_7, window_bounds = array<i64: 3, 32>}, {pipeline_mode = #tpu.pipeline_mode<synchronous>, transform_indices = @transform_8, window_bounds = array<i64: 1, 32>}, {pipeline_mode = #tpu.pipeline_mode<synchronous>, transform_indices = @transform_9, window_bounds = array<i64: 6, 32>}, {pipeline_mode = #tpu.pipeline_mode<synchronous>, transform_indices = @transform_10, window_bounds = array<i64: 1, 32>}, {pipeline_mode = #tpu.pipeline_mode<synchronous>, transform_indices = @transform_11, window_bounds = array<i64: 32, 192>}, {pipeline_mode = #tpu.pipeline_mode<synchronous>, transform_indices = @transform_12, window_bounds = array<i64: 1, 192>}, {pipeline_mode = #tpu.pipeline_mode<synchronous>, transform_indices = @transform_13, window_bounds = array<i64: 64, 192>}, {pipeline_mode = #tpu.pipeline_mode<synchronous>, transform_indices = @transform_14, window_bounds = array<i64: 1, 192>}, {pipeline_mode = #tpu.pipeline_mode<synchronous>, transform_indices = @transform_15, window_bounds = array<i64: 64, 33>}, {pipeline_mode = #tpu.pipeline_mode<synchronous>, transform_indices = @transform_16, window_bounds = array<i64: 1, 33>}, {pipeline_mode = #tpu.pipeline_mode<synchronous>, transform_indices = @transform_17, window_bounds = array<i64: 2, 16>}, {pipeline_mode = #tpu.pipeline_mode<synchronous>, transform_indices = @transform_18, window_bounds = array<i64: 32, 4>}, {pipeline_mode = #tpu.pipeline_mode<synchronous>, transform_indices = @transform_19, window_bounds = array<i64: 32, 4>}, {pipeline_mode = #tpu.pipeline_mode<synchronous>, transform_indices = @transform_20, window_bounds = array<i64: 1, 4>}, {transform_indices = @transform_21, window_bounds = array<i64: 2, 4>}]} {
    %c0 = arith.constant 0 : index
    %c0_0 = arith.constant 0 : index
    %0 = vector.load %arg5[%c0, %c0_0] : memref<16x16xf32, #tpu.memory_space<vmem>>, vector<16x16xf32>
    %c0_1 = arith.constant 0 : index
    %c0_2 = arith.constant 0 : index
    %1 = vector.load %arg3[%c0_1, %c0_2] : memref<16x3xf32, #tpu.memory_space<vmem>>, vector<16x3xf32>
    %cst = arith.constant dense<0.000000e+00> : vector<16x3xf32>
    %2 = tpu.matmul %0, %1, %cst {dimension_numbers = #tpu.dot_dimension_numbers<[1], [0], [0], [1], [0, 0, 1, 1], [], []>} : vector<16x16xf32>, vector<16x3xf32>, vector<16x3xf32> -> vector<16x3xf32>
    %c0_3 = arith.constant 0 : index
    %c0_4 = arith.constant 0 : index
    %3 = vector.load %arg6[%c0_3, %c0_4] : memref<16x16xf32, #tpu.memory_space<vmem>>, vector<16x16xf32>
    %c0_5 = arith.constant 0 : index
    %c0_6 = arith.constant 0 : index
    %4 = vector.load %arg4[%c0_5, %c0_6] : memref<16x3xf32, #tpu.memory_space<vmem>>, vector<16x3xf32>
    %cst_7 = arith.constant dense<0.000000e+00> : vector<16x3xf32>
    %5 = tpu.matmul %3, %4, %cst_7 {dimension_numbers = #tpu.dot_dimension_numbers<[1], [0], [0], [1], [0, 0, 1, 1], [], []>} : vector<16x16xf32>, vector<16x3xf32>, vector<16x3xf32> -> vector<16x3xf32>
    %6 = arith.subf %2, %5 : vector<16x3xf32>
    %c0_8 = arith.constant 0 : index
    %c0_9 = arith.constant 0 : index
    %7 = vector.load %arg2[%c0_8, %c0_9] : memref<16x5xf32, #tpu.memory_space<vmem>>, vector<16x5xf32>
    %c0_10 = arith.constant 0 : index
    %c0_11 = arith.constant 0 : index
    %8 = vector.load %arg7[%c0_10, %c0_11] : memref<5x32xf32, #tpu.memory_space<vmem>>, vector<5x32xf32>
    %cst_12 = arith.constant dense<0.000000e+00> : vector<16x32xf32>
    %9 = tpu.matmul %7, %8, %cst_12 {dimension_numbers = #tpu.dot_dimension_numbers<[1], [0], [0], [1], [0, 0, 1, 1], [], []>} : vector<16x5xf32>, vector<5x32xf32>, vector<16x32xf32> -> vector<16x32xf32>
    %c0_13 = arith.constant 0 : index
    %c0_14 = arith.constant 0 : index
    %10 = vector.load %arg8[%c0_13, %c0_14] : memref<3x32xf32, #tpu.memory_space<vmem>>, vector<3x32xf32>
    %cst_15 = arith.constant dense<0.000000e+00> : vector<16x32xf32>
    %11 = tpu.matmul %6, %10, %cst_15 {dimension_numbers = #tpu.dot_dimension_numbers<[1], [0], [0], [1], [0, 0, 1, 1], [], []>} : vector<16x3xf32>, vector<3x32xf32>, vector<16x32xf32> -> vector<16x32xf32>
    %12 = arith.addf %9, %11 : vector<16x32xf32>
    %c0_16 = arith.constant 0 : index
    %c0_17 = arith.constant 0 : index
    %13 = vector.load %arg9[%c0_16, %c0_17] : memref<1x32xf32, #tpu.memory_space<vmem>>, vector<1x32xf32>
    %14 = vector.broadcast %13 : vector<1x32xf32> to vector<16x32xf32>
    %15 = arith.addf %12, %14 : vector<16x32xf32>
    %c0_18 = arith.constant 0 : index
    %c0_19 = arith.constant 0 : index
    %16 = vector.load %arg1[%c0_18, %c0_19] : memref<2x6xf32, #tpu.memory_space<vmem>>, vector<2x6xf32>
    %c0_20 = arith.constant 0 : index
    %c0_21 = arith.constant 0 : index
    %17 = vector.load %arg10[%c0_20, %c0_21] : memref<6x32xf32, #tpu.memory_space<vmem>>, vector<6x32xf32>
    %cst_22 = arith.constant dense<0.000000e+00> : vector<2x32xf32>
    %18 = tpu.matmul %16, %17, %cst_22 {dimension_numbers = #tpu.dot_dimension_numbers<[1], [0], [0], [1], [0, 0, 1, 1], [], []>} : vector<2x6xf32>, vector<6x32xf32>, vector<2x32xf32> -> vector<2x32xf32>
    %c0_23 = arith.constant 0 : index
    %c0_24 = arith.constant 0 : index
    %19 = vector.load %arg11[%c0_23, %c0_24] : memref<1x32xf32, #tpu.memory_space<vmem>>, vector<1x32xf32>
    %20 = vector.broadcast %19 : vector<1x32xf32> to vector<2x32xf32>
    %21 = arith.addf %18, %20 : vector<2x32xf32>
    %c0_25 = arith.constant 0 : index
    %c0_26 = arith.constant 0 : index
    %22 = vector.load %arg12[%c0_25, %c0_26] : memref<32x192xf32, #tpu.memory_space<vmem>>, vector<32x192xf32>
    %cst_27 = arith.constant dense<0.000000e+00> : vector<16x192xf32>
    %23 = tpu.matmul %15, %22, %cst_27 {dimension_numbers = #tpu.dot_dimension_numbers<[1], [0], [0], [1], [0, 0, 1, 1], [], []>} : vector<16x32xf32>, vector<32x192xf32>, vector<16x192xf32> -> vector<16x192xf32>
    %c0_28 = arith.constant 0 : index
    %c0_29 = arith.constant 0 : index
    %24 = vector.load %arg13[%c0_28, %c0_29] : memref<1x192xf32, #tpu.memory_space<vmem>>, vector<1x192xf32>
    %25 = vector.broadcast %24 : vector<1x192xf32> to vector<16x192xf32>
    %26 = arith.addf %23, %25 : vector<16x192xf32>
    %c0_30 = arith.constant 0 : index
    %c0_31 = arith.constant 0 : index
    %27 = vector.load %arg14[%c0_30, %c0_31] : memref<64x192xf32, #tpu.memory_space<vmem>>, vector<64x192xf32>
    %c0_32 = arith.constant 0 : index
    %c0_33 = arith.constant 0 : index
    %28 = vector.load %arg15[%c0_32, %c0_33] : memref<1x192xf32, #tpu.memory_space<vmem>>, vector<1x192xf32>
    %cst_34 = arith.constant 0.000000e+00 : f32
    %29 = vector.broadcast %cst_34 : f32 to vector<2x64xf32>
    %30 = vector.extract_strided_slice %26 {offsets = [14, 0], sizes = [2, 192], strides = [1, 1]} : vector<16x192xf32> to vector<2x192xf32>
    %cst_35 = arith.constant dense<0.000000e+00> : vector<2x192xf32>
    %31 = tpu.matmul %29, %27, %cst_35 {dimension_numbers = #tpu.dot_dimension_numbers<[1], [0], [0], [1], [0, 0, 1, 1], [], []>} : vector<2x64xf32>, vector<64x192xf32>, vector<2x192xf32> -> vector<2x192xf32>
    %32 = vector.broadcast %28 : vector<1x192xf32> to vector<2x192xf32>
    %33 = arith.addf %31, %32 : vector<2x192xf32>
    %34 = vector.extract_strided_slice %30 {offsets = [0, 0], sizes = [2, 64], strides = [1, 1]} : vector<2x192xf32> to vector<2x64xf32>
    %35 = vector.extract_strided_slice %33 {offsets = [0, 0], sizes = [2, 64], strides = [1, 1]} : vector<2x192xf32> to vector<2x64xf32>
    %36 = arith.addf %34, %35 : vector<2x64xf32>
    %37 = arith.negf %36 : vector<2x64xf32>
    %38 = math.exp %37 : vector<2x64xf32>
    %cst_36 = arith.constant 1.000000e+00 : f32
    %39 = vector.broadcast %cst_36 : f32 to vector<2x64xf32>
    %40 = arith.addf %39, %38 : vector<2x64xf32>
    %41 = arith.divf %39, %40 : vector<2x64xf32>
    %42 = vector.extract_strided_slice %30 {offsets = [0, 64], sizes = [2, 64], strides = [1, 1]} : vector<2x192xf32> to vector<2x64xf32>
    %43 = vector.extract_strided_slice %33 {offsets = [0, 64], sizes = [2, 64], strides = [1, 1]} : vector<2x192xf32> to vector<2x64xf32>
    %44 = arith.addf %42, %43 : vector<2x64xf32>
    %45 = arith.negf %44 : vector<2x64xf32>
    %46 = math.exp %45 : vector<2x64xf32>
    %cst_37 = arith.constant 1.000000e+00 : f32
    %47 = vector.broadcast %cst_37 : f32 to vector<2x64xf32>
    %48 = arith.addf %47, %46 : vector<2x64xf32>
    %49 = arith.divf %47, %48 : vector<2x64xf32>
    %50 = vector.extract_strided_slice %30 {offsets = [0, 128], sizes = [2, 64], strides = [1, 1]} : vector<2x192xf32> to vector<2x64xf32>
    %51 = vector.extract_strided_slice %33 {offsets = [0, 128], sizes = [2, 64], strides = [1, 1]} : vector<2x192xf32> to vector<2x64xf32>
    %52 = arith.mulf %41, %51 : vector<2x64xf32>
    %53 = arith.addf %50, %52 : vector<2x64xf32>
    %54 = math.tanh %53 : vector<2x64xf32>
    %cst_38 = arith.constant 1.000000e+00 : f32
    %55 = vector.broadcast %cst_38 : f32 to vector<2x64xf32>
    %56 = arith.subf %55, %49 : vector<2x64xf32>
    %57 = arith.mulf %56, %54 : vector<2x64xf32>
    %58 = arith.mulf %49, %29 : vector<2x64xf32>
    %59 = arith.addf %57, %58 : vector<2x64xf32>
    %c14 = arith.constant 14 : index
    %c0_39 = arith.constant 0 : index
    %60 = vector.load %arg23[%c14, %c0_39] : memref<16x64xf32, #tpu.memory_space<vmem>>, vector<2x64xf32>
    tpu.vector_store %arg23[%c14, %c0_39], %59 {strides = array<i32>} : memref<16x64xf32, #tpu.memory_space<vmem>>, vector<2x64xf32>,
    %61 = vector.extract_strided_slice %26 {offsets = [12, 0], sizes = [2, 192], strides = [1, 1]} : vector<16x192xf32> to vector<2x192xf32>
    %cst_40 = arith.constant dense<0.000000e+00> : vector<2x192xf32>
    %62 = tpu.matmul %59, %27, %cst_40 {dimension_numbers = #tpu.dot_dimension_numbers<[1], [0], [0], [1], [0, 0, 1, 1], [], []>} : vector<2x64xf32>, vector<64x192xf32>, vector<2x192xf32> -> vector<2x192xf32>
    %63 = vector.broadcast %28 : vector<1x192xf32> to vector<2x192xf32>
    %64 = arith.addf %62, %63 : vector<2x192xf32>
    %65 = vector.extract_strided_slice %61 {offsets = [0, 0], sizes = [2, 64], strides = [1, 1]} : vector<2x192xf32> to vector<2x64xf32>
    %66 = vector.extract_strided_slice %64 {offsets = [0, 0], sizes = [2, 64], strides = [1, 1]} : vector<2x192xf32> to vector<2x64xf32>
    %67 = arith.addf %65, %66 : vector<2x64xf32>
    %68 = arith.negf %67 : vector<2x64xf32>
    %69 = math.exp %68 : vector<2x64xf32>
    %cst_41 = arith.constant 1.000000e+00 : f32
    %70 = vector.broadcast %cst_41 : f32 to vector<2x64xf32>
    %71 = arith.addf %70, %69 : vector<2x64xf32>
    %72 = arith.divf %70, %71 : vector<2x64xf32>
    %73 = vector.extract_strided_slice %61 {offsets = [0, 64], sizes = [2, 64], strides = [1, 1]} : vector<2x192xf32> to vector<2x64xf32>
    %74 = vector.extract_strided_slice %64 {offsets = [0, 64], sizes = [2, 64], strides = [1, 1]} : vector<2x192xf32> to vector<2x64xf32>
    %75 = arith.addf %73, %74 : vector<2x64xf32>
    %76 = arith.negf %75 : vector<2x64xf32>
    %77 = math.exp %76 : vector<2x64xf32>
    %cst_42 = arith.constant 1.000000e+00 : f32
    %78 = vector.broadcast %cst_42 : f32 to vector<2x64xf32>
    %79 = arith.addf %78, %77 : vector<2x64xf32>
    %80 = arith.divf %78, %79 : vector<2x64xf32>
    %81 = vector.extract_strided_slice %61 {offsets = [0, 128], sizes = [2, 64], strides = [1, 1]} : vector<2x192xf32> to vector<2x64xf32>
    %82 = vector.extract_strided_slice %64 {offsets = [0, 128], sizes = [2, 64], strides = [1, 1]} : vector<2x192xf32> to vector<2x64xf32>
    %83 = arith.mulf %72, %82 : vector<2x64xf32>
    %84 = arith.addf %81, %83 : vector<2x64xf32>
    %85 = math.tanh %84 : vector<2x64xf32>
    %cst_43 = arith.constant 1.000000e+00 : f32
    %86 = vector.broadcast %cst_43 : f32 to vector<2x64xf32>
    %87 = arith.subf %86, %80 : vector<2x64xf32>
    %88 = arith.mulf %87, %85 : vector<2x64xf32>
    %89 = arith.mulf %80, %59 : vector<2x64xf32>
    %90 = arith.addf %88, %89 : vector<2x64xf32>
    %c12 = arith.constant 12 : index
    %c0_44 = arith.constant 0 : index
    %91 = vector.load %arg23[%c12, %c0_44] : memref<16x64xf32, #tpu.memory_space<vmem>>, vector<2x64xf32>
    tpu.vector_store %arg23[%c12, %c0_44], %90 {strides = array<i32>} : memref<16x64xf32, #tpu.memory_space<vmem>>, vector<2x64xf32>,
    %92 = vector.extract_strided_slice %26 {offsets = [10, 0], sizes = [2, 192], strides = [1, 1]} : vector<16x192xf32> to vector<2x192xf32>
    %cst_45 = arith.constant dense<0.000000e+00> : vector<2x192xf32>
    %93 = tpu.matmul %90, %27, %cst_45 {dimension_numbers = #tpu.dot_dimension_numbers<[1], [0], [0], [1], [0, 0, 1, 1], [], []>} : vector<2x64xf32>, vector<64x192xf32>, vector<2x192xf32> -> vector<2x192xf32>
    %94 = vector.broadcast %28 : vector<1x192xf32> to vector<2x192xf32>
    %95 = arith.addf %93, %94 : vector<2x192xf32>
    %96 = vector.extract_strided_slice %92 {offsets = [0, 0], sizes = [2, 64], strides = [1, 1]} : vector<2x192xf32> to vector<2x64xf32>
    %97 = vector.extract_strided_slice %95 {offsets = [0, 0], sizes = [2, 64], strides = [1, 1]} : vector<2x192xf32> to vector<2x64xf32>
    %98 = arith.addf %96, %97 : vector<2x64xf32>
    %99 = arith.negf %98 : vector<2x64xf32>
    %100 = math.exp %99 : vector<2x64xf32>
    %cst_46 = arith.constant 1.000000e+00 : f32
    %101 = vector.broadcast %cst_46 : f32 to vector<2x64xf32>
    %102 = arith.addf %101, %100 : vector<2x64xf32>
    %103 = arith.divf %101, %102 : vector<2x64xf32>
    %104 = vector.extract_strided_slice %92 {offsets = [0, 64], sizes = [2, 64], strides = [1, 1]} : vector<2x192xf32> to vector<2x64xf32>
    %105 = vector.extract_strided_slice %95 {offsets = [0, 64], sizes = [2, 64], strides = [1, 1]} : vector<2x192xf32> to vector<2x64xf32>
    %106 = arith.addf %104, %105 : vector<2x64xf32>
    %107 = arith.negf %106 : vector<2x64xf32>
    %108 = math.exp %107 : vector<2x64xf32>
    %cst_47 = arith.constant 1.000000e+00 : f32
    %109 = vector.broadcast %cst_47 : f32 to vector<2x64xf32>
    %110 = arith.addf %109, %108 : vector<2x64xf32>
    %111 = arith.divf %109, %110 : vector<2x64xf32>
    %112 = vector.extract_strided_slice %92 {offsets = [0, 128], sizes = [2, 64], strides = [1, 1]} : vector<2x192xf32> to vector<2x64xf32>
    %113 = vector.extract_strided_slice %95 {offsets = [0, 128], sizes = [2, 64], strides = [1, 1]} : vector<2x192xf32> to vector<2x64xf32>
    %114 = arith.mulf %103, %113 : vector<2x64xf32>
    %115 = arith.addf %112, %114 : vector<2x64xf32>
    %116 = math.tanh %115 : vector<2x64xf32>
    %cst_48 = arith.constant 1.000000e+00 : f32
    %117 = vector.broadcast %cst_48 : f32 to vector<2x64xf32>
    %118 = arith.subf %117, %111 : vector<2x64xf32>
    %119 = arith.mulf %118, %116 : vector<2x64xf32>
    %120 = arith.mulf %111, %90 : vector<2x64xf32>
    %121 = arith.addf %119, %120 : vector<2x64xf32>
    %c10 = arith.constant 10 : index
    %c0_49 = arith.constant 0 : index
    %122 = vector.load %arg23[%c10, %c0_49] : memref<16x64xf32, #tpu.memory_space<vmem>>, vector<2x64xf32>
    tpu.vector_store %arg23[%c10, %c0_49], %121 {strides = array<i32>} : memref<16x64xf32, #tpu.memory_space<vmem>>, vector<2x64xf32>,
    %123 = vector.extract_strided_slice %26 {offsets = [8, 0], sizes = [2, 192], strides = [1, 1]} : vector<16x192xf32> to vector<2x192xf32>
    %cst_50 = arith.constant dense<0.000000e+00> : vector<2x192xf32>
    %124 = tpu.matmul %121, %27, %cst_50 {dimension_numbers = #tpu.dot_dimension_numbers<[1], [0], [0], [1], [0, 0, 1, 1], [], []>} : vector<2x64xf32>, vector<64x192xf32>, vector<2x192xf32> -> vector<2x192xf32>
    %125 = vector.broadcast %28 : vector<1x192xf32> to vector<2x192xf32>
    %126 = arith.addf %124, %125 : vector<2x192xf32>
    %127 = vector.extract_strided_slice %123 {offsets = [0, 0], sizes = [2, 64], strides = [1, 1]} : vector<2x192xf32> to vector<2x64xf32>
    %128 = vector.extract_strided_slice %126 {offsets = [0, 0], sizes = [2, 64], strides = [1, 1]} : vector<2x192xf32> to vector<2x64xf32>
    %129 = arith.addf %127, %128 : vector<2x64xf32>
    %130 = arith.negf %129 : vector<2x64xf32>
    %131 = math.exp %130 : vector<2x64xf32>
    %cst_51 = arith.constant 1.000000e+00 : f32
    %132 = vector.broadcast %cst_51 : f32 to vector<2x64xf32>
    %133 = arith.addf %132, %131 : vector<2x64xf32>
    %134 = arith.divf %132, %133 : vector<2x64xf32>
    %135 = vector.extract_strided_slice %123 {offsets = [0, 64], sizes = [2, 64], strides = [1, 1]} : vector<2x192xf32> to vector<2x64xf32>
    %136 = vector.extract_strided_slice %126 {offsets = [0, 64], sizes = [2, 64], strides = [1, 1]} : vector<2x192xf32> to vector<2x64xf32>
    %137 = arith.addf %135, %136 : vector<2x64xf32>
    %138 = arith.negf %137 : vector<2x64xf32>
    %139 = math.exp %138 : vector<2x64xf32>
    %cst_52 = arith.constant 1.000000e+00 : f32
    %140 = vector.broadcast %cst_52 : f32 to vector<2x64xf32>
    %141 = arith.addf %140, %139 : vector<2x64xf32>
    %142 = arith.divf %140, %141 : vector<2x64xf32>
    %143 = vector.extract_strided_slice %123 {offsets = [0, 128], sizes = [2, 64], strides = [1, 1]} : vector<2x192xf32> to vector<2x64xf32>
    %144 = vector.extract_strided_slice %126 {offsets = [0, 128], sizes = [2, 64], strides = [1, 1]} : vector<2x192xf32> to vector<2x64xf32>
    %145 = arith.mulf %134, %144 : vector<2x64xf32>
    %146 = arith.addf %143, %145 : vector<2x64xf32>
    %147 = math.tanh %146 : vector<2x64xf32>
    %cst_53 = arith.constant 1.000000e+00 : f32
    %148 = vector.broadcast %cst_53 : f32 to vector<2x64xf32>
    %149 = arith.subf %148, %142 : vector<2x64xf32>
    %150 = arith.mulf %149, %147 : vector<2x64xf32>
    %151 = arith.mulf %142, %121 : vector<2x64xf32>
    %152 = arith.addf %150, %151 : vector<2x64xf32>
    %c8 = arith.constant 8 : index
    %c0_54 = arith.constant 0 : index
    %153 = vector.load %arg23[%c8, %c0_54] : memref<16x64xf32, #tpu.memory_space<vmem>>, vector<2x64xf32>
    tpu.vector_store %arg23[%c8, %c0_54], %152 {strides = array<i32>} : memref<16x64xf32, #tpu.memory_space<vmem>>, vector<2x64xf32>,
    %154 = vector.extract_strided_slice %26 {offsets = [6, 0], sizes = [2, 192], strides = [1, 1]} : vector<16x192xf32> to vector<2x192xf32>
    %cst_55 = arith.constant dense<0.000000e+00> : vector<2x192xf32>
    %155 = tpu.matmul %152, %27, %cst_55 {dimension_numbers = #tpu.dot_dimension_numbers<[1], [0], [0], [1], [0, 0, 1, 1], [], []>} : vector<2x64xf32>, vector<64x192xf32>, vector<2x192xf32> -> vector<2x192xf32>
    %156 = vector.broadcast %28 : vector<1x192xf32> to vector<2x192xf32>
    %157 = arith.addf %155, %156 : vector<2x192xf32>
    %158 = vector.extract_strided_slice %154 {offsets = [0, 0], sizes = [2, 64], strides = [1, 1]} : vector<2x192xf32> to vector<2x64xf32>
    %159 = vector.extract_strided_slice %157 {offsets = [0, 0], sizes = [2, 64], strides = [1, 1]} : vector<2x192xf32> to vector<2x64xf32>
    %160 = arith.addf %158, %159 : vector<2x64xf32>
    %161 = arith.negf %160 : vector<2x64xf32>
    %162 = math.exp %161 : vector<2x64xf32>
    %cst_56 = arith.constant 1.000000e+00 : f32
    %163 = vector.broadcast %cst_56 : f32 to vector<2x64xf32>
    %164 = arith.addf %163, %162 : vector<2x64xf32>
    %165 = arith.divf %163, %164 : vector<2x64xf32>
    %166 = vector.extract_strided_slice %154 {offsets = [0, 64], sizes = [2, 64], strides = [1, 1]} : vector<2x192xf32> to vector<2x64xf32>
    %167 = vector.extract_strided_slice %157 {offsets = [0, 64], sizes = [2, 64], strides = [1, 1]} : vector<2x192xf32> to vector<2x64xf32>
    %168 = arith.addf %166, %167 : vector<2x64xf32>
    %169 = arith.negf %168 : vector<2x64xf32>
    %170 = math.exp %169 : vector<2x64xf32>
    %cst_57 = arith.constant 1.000000e+00 : f32
    %171 = vector.broadcast %cst_57 : f32 to vector<2x64xf32>
    %172 = arith.addf %171, %170 : vector<2x64xf32>
    %173 = arith.divf %171, %172 : vector<2x64xf32>
    %174 = vector.extract_strided_slice %154 {offsets = [0, 128], sizes = [2, 64], strides = [1, 1]} : vector<2x192xf32> to vector<2x64xf32>
    %175 = vector.extract_strided_slice %157 {offsets = [0, 128], sizes = [2, 64], strides = [1, 1]} : vector<2x192xf32> to vector<2x64xf32>
    %176 = arith.mulf %165, %175 : vector<2x64xf32>
    %177 = arith.addf %174, %176 : vector<2x64xf32>
    %178 = math.tanh %177 : vector<2x64xf32>
    %cst_58 = arith.constant 1.000000e+00 : f32
    %179 = vector.broadcast %cst_58 : f32 to vector<2x64xf32>
    %180 = arith.subf %179, %173 : vector<2x64xf32>
    %181 = arith.mulf %180, %178 : vector<2x64xf32>
    %182 = arith.mulf %173, %152 : vector<2x64xf32>
    %183 = arith.addf %181, %182 : vector<2x64xf32>
    %c6 = arith.constant 6 : index
    %c0_59 = arith.constant 0 : index
    %184 = vector.load %arg23[%c6, %c0_59] : memref<16x64xf32, #tpu.memory_space<vmem>>, vector<2x64xf32>
    tpu.vector_store %arg23[%c6, %c0_59], %183 {strides = array<i32>} : memref<16x64xf32, #tpu.memory_space<vmem>>, vector<2x64xf32>,
    %185 = vector.extract_strided_slice %26 {offsets = [4, 0], sizes = [2, 192], strides = [1, 1]} : vector<16x192xf32> to vector<2x192xf32>
    %cst_60 = arith.constant dense<0.000000e+00> : vector<2x192xf32>
    %186 = tpu.matmul %183, %27, %cst_60 {dimension_numbers = #tpu.dot_dimension_numbers<[1], [0], [0], [1], [0, 0, 1, 1], [], []>} : vector<2x64xf32>, vector<64x192xf32>, vector<2x192xf32> -> vector<2x192xf32>
    %187 = vector.broadcast %28 : vector<1x192xf32> to vector<2x192xf32>
    %188 = arith.addf %186, %187 : vector<2x192xf32>
    %189 = vector.extract_strided_slice %185 {offsets = [0, 0], sizes = [2, 64], strides = [1, 1]} : vector<2x192xf32> to vector<2x64xf32>
    %190 = vector.extract_strided_slice %188 {offsets = [0, 0], sizes = [2, 64], strides = [1, 1]} : vector<2x192xf32> to vector<2x64xf32>
    %191 = arith.addf %189, %190 : vector<2x64xf32>
    %192 = arith.negf %191 : vector<2x64xf32>
    %193 = math.exp %192 : vector<2x64xf32>
    %cst_61 = arith.constant 1.000000e+00 : f32
    %194 = vector.broadcast %cst_61 : f32 to vector<2x64xf32>
    %195 = arith.addf %194, %193 : vector<2x64xf32>
    %196 = arith.divf %194, %195 : vector<2x64xf32>
    %197 = vector.extract_strided_slice %185 {offsets = [0, 64], sizes = [2, 64], strides = [1, 1]} : vector<2x192xf32> to vector<2x64xf32>
    %198 = vector.extract_strided_slice %188 {offsets = [0, 64], sizes = [2, 64], strides = [1, 1]} : vector<2x192xf32> to vector<2x64xf32>
    %199 = arith.addf %197, %198 : vector<2x64xf32>
    %200 = arith.negf %199 : vector<2x64xf32>
    %201 = math.exp %200 : vector<2x64xf32>
    %cst_62 = arith.constant 1.000000e+00 : f32
    %202 = vector.broadcast %cst_62 : f32 to vector<2x64xf32>
    %203 = arith.addf %202, %201 : vector<2x64xf32>
    %204 = arith.divf %202, %203 : vector<2x64xf32>
    %205 = vector.extract_strided_slice %185 {offsets = [0, 128], sizes = [2, 64], strides = [1, 1]} : vector<2x192xf32> to vector<2x64xf32>
    %206 = vector.extract_strided_slice %188 {offsets = [0, 128], sizes = [2, 64], strides = [1, 1]} : vector<2x192xf32> to vector<2x64xf32>
    %207 = arith.mulf %196, %206 : vector<2x64xf32>
    %208 = arith.addf %205, %207 : vector<2x64xf32>
    %209 = math.tanh %208 : vector<2x64xf32>
    %cst_63 = arith.constant 1.000000e+00 : f32
    %210 = vector.broadcast %cst_63 : f32 to vector<2x64xf32>
    %211 = arith.subf %210, %204 : vector<2x64xf32>
    %212 = arith.mulf %211, %209 : vector<2x64xf32>
    %213 = arith.mulf %204, %183 : vector<2x64xf32>
    %214 = arith.addf %212, %213 : vector<2x64xf32>
    %c4 = arith.constant 4 : index
    %c0_64 = arith.constant 0 : index
    %215 = vector.load %arg23[%c4, %c0_64] : memref<16x64xf32, #tpu.memory_space<vmem>>, vector<2x64xf32>
    tpu.vector_store %arg23[%c4, %c0_64], %214 {strides = array<i32>} : memref<16x64xf32, #tpu.memory_space<vmem>>, vector<2x64xf32>,
    %216 = vector.extract_strided_slice %26 {offsets = [2, 0], sizes = [2, 192], strides = [1, 1]} : vector<16x192xf32> to vector<2x192xf32>
    %cst_65 = arith.constant dense<0.000000e+00> : vector<2x192xf32>
    %217 = tpu.matmul %214, %27, %cst_65 {dimension_numbers = #tpu.dot_dimension_numbers<[1], [0], [0], [1], [0, 0, 1, 1], [], []>} : vector<2x64xf32>, vector<64x192xf32>, vector<2x192xf32> -> vector<2x192xf32>
    %218 = vector.broadcast %28 : vector<1x192xf32> to vector<2x192xf32>
    %219 = arith.addf %217, %218 : vector<2x192xf32>
    %220 = vector.extract_strided_slice %216 {offsets = [0, 0], sizes = [2, 64], strides = [1, 1]} : vector<2x192xf32> to vector<2x64xf32>
    %221 = vector.extract_strided_slice %219 {offsets = [0, 0], sizes = [2, 64], strides = [1, 1]} : vector<2x192xf32> to vector<2x64xf32>
    %222 = arith.addf %220, %221 : vector<2x64xf32>
    %223 = arith.negf %222 : vector<2x64xf32>
    %224 = math.exp %223 : vector<2x64xf32>
    %cst_66 = arith.constant 1.000000e+00 : f32
    %225 = vector.broadcast %cst_66 : f32 to vector<2x64xf32>
    %226 = arith.addf %225, %224 : vector<2x64xf32>
    %227 = arith.divf %225, %226 : vector<2x64xf32>
    %228 = vector.extract_strided_slice %216 {offsets = [0, 64], sizes = [2, 64], strides = [1, 1]} : vector<2x192xf32> to vector<2x64xf32>
    %229 = vector.extract_strided_slice %219 {offsets = [0, 64], sizes = [2, 64], strides = [1, 1]} : vector<2x192xf32> to vector<2x64xf32>
    %230 = arith.addf %228, %229 : vector<2x64xf32>
    %231 = arith.negf %230 : vector<2x64xf32>
    %232 = math.exp %231 : vector<2x64xf32>
    %cst_67 = arith.constant 1.000000e+00 : f32
    %233 = vector.broadcast %cst_67 : f32 to vector<2x64xf32>
    %234 = arith.addf %233, %232 : vector<2x64xf32>
    %235 = arith.divf %233, %234 : vector<2x64xf32>
    %236 = vector.extract_strided_slice %216 {offsets = [0, 128], sizes = [2, 64], strides = [1, 1]} : vector<2x192xf32> to vector<2x64xf32>
    %237 = vector.extract_strided_slice %219 {offsets = [0, 128], sizes = [2, 64], strides = [1, 1]} : vector<2x192xf32> to vector<2x64xf32>
    %238 = arith.mulf %227, %237 : vector<2x64xf32>
    %239 = arith.addf %236, %238 : vector<2x64xf32>
    %240 = math.tanh %239 : vector<2x64xf32>
    %cst_68 = arith.constant 1.000000e+00 : f32
    %241 = vector.broadcast %cst_68 : f32 to vector<2x64xf32>
    %242 = arith.subf %241, %235 : vector<2x64xf32>
    %243 = arith.mulf %242, %240 : vector<2x64xf32>
    %244 = arith.mulf %235, %214 : vector<2x64xf32>
    %245 = arith.addf %243, %244 : vector<2x64xf32>
    %c2 = arith.constant 2 : index
    %c0_69 = arith.constant 0 : index
    %246 = vector.load %arg23[%c2, %c0_69] : memref<16x64xf32, #tpu.memory_space<vmem>>, vector<2x64xf32>
    tpu.vector_store %arg23[%c2, %c0_69], %245 {strides = array<i32>} : memref<16x64xf32, #tpu.memory_space<vmem>>, vector<2x64xf32>,
    %247 = vector.extract_strided_slice %26 {offsets = [0, 0], sizes = [2, 192], strides = [1, 1]} : vector<16x192xf32> to vector<2x192xf32>
    %cst_70 = arith.constant dense<0.000000e+00> : vector<2x192xf32>
    %248 = tpu.matmul %245, %27, %cst_70 {dimension_numbers = #tpu.dot_dimension_numbers<[1], [0], [0], [1], [0, 0, 1, 1], [], []>} : vector<2x64xf32>, vector<64x192xf32>, vector<2x192xf32> -> vector<2x192xf32>
    %249 = vector.broadcast %28 : vector<1x192xf32> to vector<2x192xf32>
    %250 = arith.addf %248, %249 : vector<2x192xf32>
    %251 = vector.extract_strided_slice %247 {offsets = [0, 0], sizes = [2, 64], strides = [1, 1]} : vector<2x192xf32> to vector<2x64xf32>
    %252 = vector.extract_strided_slice %250 {offsets = [0, 0], sizes = [2, 64], strides = [1, 1]} : vector<2x192xf32> to vector<2x64xf32>
    %253 = arith.addf %251, %252 : vector<2x64xf32>
    %254 = arith.negf %253 : vector<2x64xf32>
    %255 = math.exp %254 : vector<2x64xf32>
    %cst_71 = arith.constant 1.000000e+00 : f32
    %256 = vector.broadcast %cst_71 : f32 to vector<2x64xf32>
    %257 = arith.addf %256, %255 : vector<2x64xf32>
    %258 = arith.divf %256, %257 : vector<2x64xf32>
    %259 = vector.extract_strided_slice %247 {offsets = [0, 64], sizes = [2, 64], strides = [1, 1]} : vector<2x192xf32> to vector<2x64xf32>
    %260 = vector.extract_strided_slice %250 {offsets = [0, 64], sizes = [2, 64], strides = [1, 1]} : vector<2x192xf32> to vector<2x64xf32>
    %261 = arith.addf %259, %260 : vector<2x64xf32>
    %262 = arith.negf %261 : vector<2x64xf32>
    %263 = math.exp %262 : vector<2x64xf32>
    %cst_72 = arith.constant 1.000000e+00 : f32
    %264 = vector.broadcast %cst_72 : f32 to vector<2x64xf32>
    %265 = arith.addf %264, %263 : vector<2x64xf32>
    %266 = arith.divf %264, %265 : vector<2x64xf32>
    %267 = vector.extract_strided_slice %247 {offsets = [0, 128], sizes = [2, 64], strides = [1, 1]} : vector<2x192xf32> to vector<2x64xf32>
    %268 = vector.extract_strided_slice %250 {offsets = [0, 128], sizes = [2, 64], strides = [1, 1]} : vector<2x192xf32> to vector<2x64xf32>
    %269 = arith.mulf %258, %268 : vector<2x64xf32>
    %270 = arith.addf %267, %269 : vector<2x64xf32>
    %271 = math.tanh %270 : vector<2x64xf32>
    %cst_73 = arith.constant 1.000000e+00 : f32
    %272 = vector.broadcast %cst_73 : f32 to vector<2x64xf32>
    %273 = arith.subf %272, %266 : vector<2x64xf32>
    %274 = arith.mulf %273, %271 : vector<2x64xf32>
    %275 = arith.mulf %266, %245 : vector<2x64xf32>
    %276 = arith.addf %274, %275 : vector<2x64xf32>
    %c0_74 = arith.constant 0 : index
    %c0_75 = arith.constant 0 : index
    %277 = vector.load %arg23[%c0_74, %c0_75] : memref<16x64xf32, #tpu.memory_space<vmem>>, vector<2x64xf32>
    tpu.vector_store %arg23[%c0_74, %c0_75], %276 {strides = array<i32>} : memref<16x64xf32, #tpu.memory_space<vmem>>, vector<2x64xf32>,
    %c0_76 = arith.constant 0 : index
    %c0_77 = arith.constant 0 : index
    %278 = vector.load %arg23[%c0_76, %c0_77] : memref<16x64xf32, #tpu.memory_space<vmem>>, vector<16x64xf32>
    %c0_78 = arith.constant 0 : index
    %c0_79 = arith.constant 0 : index
    %279 = vector.load %arg16[%c0_78, %c0_79] : memref<64x33xf32, #tpu.memory_space<vmem>>, vector<64x33xf32>
    %cst_80 = arith.constant dense<0.000000e+00> : vector<16x33xf32>
    %280 = tpu.matmul %278, %279, %cst_80 {dimension_numbers = #tpu.dot_dimension_numbers<[1], [0], [0], [1], [0, 0, 1, 1], [], []>} : vector<16x64xf32>, vector<64x33xf32>, vector<16x33xf32> -> vector<16x33xf32>
    %c0_81 = arith.constant 0 : index
    %c0_82 = arith.constant 0 : index
    %281 = vector.load %arg17[%c0_81, %c0_82] : memref<1x33xf32, #tpu.memory_space<vmem>>, vector<1x33xf32>
    %282 = vector.broadcast %281 : vector<1x33xf32> to vector<16x33xf32>
    %283 = arith.addf %280, %282 : vector<16x33xf32>
    %284 = vector.extract_strided_slice %283 {offsets = [0, 0], sizes = [16, 32], strides = [1, 1]} : vector<16x33xf32> to vector<16x32xf32>
    %285 = math.tanh %284 : vector<16x32xf32>
    %286 = vector.extract_strided_slice %283 {offsets = [0, 32], sizes = [16, 1], strides = [1, 1]} : vector<16x33xf32> to vector<16x1xf32>
    %287 = vector.shape_cast %286 : vector<16x1xf32> to vector<1x16x1xf32>
    %cst_83 = arith.constant dense<0xFF800000> : vector<1xf32>
    %288 = vector.multi_reduction <maximumf>, %287, %cst_83 [1, 2] : vector<1x16x1xf32> to vector<1xf32>
    %289 = vector.shape_cast %288 : vector<1xf32> to vector<1x1x1xf32>
    %290 = vector.extract %289[0, 0, 0] : f32 from vector<1x1x1xf32>
    %291 = vector.broadcast %290 : f32 to vector<1x1xf32>
    %292 = vector.broadcast %291 : vector<1x1xf32> to vector<16x1xf32>
    %293 = arith.subf %286, %292 : vector<16x1xf32>
    %294 = math.exp %293 : vector<16x1xf32>
    %295 = vector.broadcast %294 : vector<16x1xf32> to vector<16x32xf32>
    %296 = arith.mulf %295, %285 : vector<16x32xf32>
    %297 = arith.mulf %296, %15 : vector<16x32xf32>
    %c0_84 = arith.constant 0 : index
    %c0_85 = arith.constant 0 : index
    %298 = vector.load %arg18[%c0_84, %c0_85] : memref<2x16xf32, #tpu.memory_space<vmem>>, vector<2x16xf32>
    %cst_86 = arith.constant dense<0.000000e+00> : vector<2x32xf32>
    %299 = tpu.matmul %298, %297, %cst_86 {dimension_numbers = #tpu.dot_dimension_numbers<[1], [0], [0], [1], [0, 0, 1, 1], [], []>} : vector<2x16xf32>, vector<16x32xf32>, vector<2x32xf32> -> vector<2x32xf32>
    %c0_87 = arith.constant 0 : index
    %c0_88 = arith.constant 0 : index
    %300 = vector.load %arg18[%c0_87, %c0_88] : memref<2x16xf32, #tpu.memory_space<vmem>>, vector<2x16xf32>
    %cst_89 = arith.constant dense<0.000000e+00> : vector<2x1xf32>
    %301 = tpu.matmul %300, %294, %cst_89 {dimension_numbers = #tpu.dot_dimension_numbers<[1], [0], [0], [1], [0, 0, 1, 1], [], []>} : vector<2x16xf32>, vector<16x1xf32>, vector<2x1xf32> -> vector<2x1xf32>
    %302 = tpu.reciprocal %301 {approx = true} : vector<2x1xf32> -> vector<2x1xf32>
    %303 = vector.broadcast %302 : vector<2x1xf32> to vector<2x32xf32>
    %304 = arith.mulf %299, %303 : vector<2x32xf32>
    %c0_90 = arith.constant 0 : index
    %c0_91 = arith.constant 0 : index
    %305 = vector.load %arg19[%c0_90, %c0_91] : memref<32x4xf32, #tpu.memory_space<vmem>>, vector<32x4xf32>
    %cst_92 = arith.constant dense<0.000000e+00> : vector<2x4xf32>
    %306 = tpu.matmul %21, %305, %cst_92 {dimension_numbers = #tpu.dot_dimension_numbers<[1], [0], [0], [1], [0, 0, 1, 1], [], []>} : vector<2x32xf32>, vector<32x4xf32>, vector<2x4xf32> -> vector<2x4xf32>
    %c0_93 = arith.constant 0 : index
    %c0_94 = arith.constant 0 : index
    %307 = vector.load %arg20[%c0_93, %c0_94] : memref<32x4xf32, #tpu.memory_space<vmem>>, vector<32x4xf32>
    %cst_95 = arith.constant dense<0.000000e+00> : vector<2x4xf32>
    %308 = tpu.matmul %304, %307, %cst_95 {dimension_numbers = #tpu.dot_dimension_numbers<[1], [0], [0], [1], [0, 0, 1, 1], [], []>} : vector<2x32xf32>, vector<32x4xf32>, vector<2x4xf32> -> vector<2x4xf32>
    %309 = arith.addf %306, %308 : vector<2x4xf32>
    %c0_96 = arith.constant 0 : index
    %c0_97 = arith.constant 0 : index
    %310 = vector.load %arg21[%c0_96, %c0_97] : memref<1x4xf32, #tpu.memory_space<vmem>>, vector<1x4xf32>
    %311 = vector.broadcast %310 : vector<1x4xf32> to vector<2x4xf32>
    %312 = arith.addf %309, %311 : vector<2x4xf32>
    %c0_98 = arith.constant 0 : index
    %c0_99 = arith.constant 0 : index
    %313 = vector.load %arg22[%c0_98, %c0_99] : memref<2x4xf32, #tpu.memory_space<vmem>>, vector<2x4xf32>
    tpu.vector_store %arg22[%c0_98, %c0_99], %312 {strides = array<i32>} : memref<2x4xf32, #tpu.memory_space<vmem>>, vector<2x4xf32>,
    return
  }
  func.func @transform_0(%arg0: i32) -> (i32, i32) {
    %c0_i32 = arith.constant 0 : i32
    %c0_i32_0 = arith.constant 0 : i32
    %c0_i32_1 = arith.constant 0 : i32
    return %c0_i32, %c0_i32_0 : i32, i32
  }
  func.func @transform_1(%arg0: i32) -> (i32, i32) {
    %c0_i32 = arith.constant 0 : i32
    %c0_i32_0 = arith.constant 0 : i32
    %c0_i32_1 = arith.constant 0 : i32
    return %c0_i32, %c0_i32_0 : i32, i32
  }
  func.func @transform_2(%arg0: i32) -> (i32, i32) {
    %c0_i32 = arith.constant 0 : i32
    %c0_i32_0 = arith.constant 0 : i32
    %c0_i32_1 = arith.constant 0 : i32
    return %c0_i32, %c0_i32_0 : i32, i32
  }
  func.func @transform_3(%arg0: i32) -> (i32, i32) {
    %c0_i32 = arith.constant 0 : i32
    %c0_i32_0 = arith.constant 0 : i32
    %c0_i32_1 = arith.constant 0 : i32
    return %c0_i32, %c0_i32_0 : i32, i32
  }
  func.func @transform_4(%arg0: i32) -> (i32, i32) {
    %c0_i32 = arith.constant 0 : i32
    %c0_i32_0 = arith.constant 0 : i32
    %c0_i32_1 = arith.constant 0 : i32
    return %c0_i32, %c0_i32_0 : i32, i32
  }
  func.func @transform_5(%arg0: i32) -> (i32, i32) {
    %c0_i32 = arith.constant 0 : i32
    %c0_i32_0 = arith.constant 0 : i32
    %c0_i32_1 = arith.constant 0 : i32
    return %c0_i32, %c0_i32_0 : i32, i32
  }
  func.func @transform_6(%arg0: i32) -> (i32, i32) {
    %c0_i32 = arith.constant 0 : i32
    %c0_i32_0 = arith.constant 0 : i32
    %c0_i32_1 = arith.constant 0 : i32
    return %c0_i32, %c0_i32_0 : i32, i32
  }
  func.func @transform_7(%arg0: i32) -> (i32, i32) {
    %c0_i32 = arith.constant 0 : i32
    %c0_i32_0 = arith.constant 0 : i32
    %c0_i32_1 = arith.constant 0 : i32
    return %c0_i32, %c0_i32_0 : i32, i32
  }
  func.func @transform_8(%arg0: i32) -> (i32, i32) {
    %c0_i32 = arith.constant 0 : i32
    %c0_i32_0 = arith.constant 0 : i32
    %c0_i32_1 = arith.constant 0 : i32
    return %c0_i32, %c0_i32_0 : i32, i32
  }
  func.func @transform_9(%arg0: i32) -> (i32, i32) {
    %c0_i32 = arith.constant 0 : i32
    %c0_i32_0 = arith.constant 0 : i32
    %c0_i32_1 = arith.constant 0 : i32
    return %c0_i32, %c0_i32_0 : i32, i32
  }
  func.func @transform_10(%arg0: i32) -> (i32, i32) {
    %c0_i32 = arith.constant 0 : i32
    %c0_i32_0 = arith.constant 0 : i32
    %c0_i32_1 = arith.constant 0 : i32
    return %c0_i32, %c0_i32_0 : i32, i32
  }
  func.func @transform_11(%arg0: i32) -> (i32, i32) {
    %c0_i32 = arith.constant 0 : i32
    %c0_i32_0 = arith.constant 0 : i32
    %c0_i32_1 = arith.constant 0 : i32
    return %c0_i32, %c0_i32_0 : i32, i32
  }
  func.func @transform_12(%arg0: i32) -> (i32, i32) {
    %c0_i32 = arith.constant 0 : i32
    %c0_i32_0 = arith.constant 0 : i32
    %c0_i32_1 = arith.constant 0 : i32
    return %c0_i32, %c0_i32_0 : i32, i32
  }
  func.func @transform_13(%arg0: i32) -> (i32, i32) {
    %c0_i32 = arith.constant 0 : i32
    %c0_i32_0 = arith.constant 0 : i32
    %c0_i32_1 = arith.constant 0 : i32
    return %c0_i32, %c0_i32_0 : i32, i32
  }
  func.func @transform_14(%arg0: i32) -> (i32, i32) {
    %c0_i32 = arith.constant 0 : i32
    %c0_i32_0 = arith.constant 0 : i32
    %c0_i32_1 = arith.constant 0 : i32
    return %c0_i32, %c0_i32_0 : i32, i32
  }
  func.func @transform_15(%arg0: i32) -> (i32, i32) {
    %c0_i32 = arith.constant 0 : i32
    %c0_i32_0 = arith.constant 0 : i32
    %c0_i32_1 = arith.constant 0 : i32
    return %c0_i32, %c0_i32_0 : i32, i32
  }
  func.func @transform_16(%arg0: i32) -> (i32, i32) {
    %c0_i32 = arith.constant 0 : i32
    %c0_i32_0 = arith.constant 0 : i32
    %c0_i32_1 = arith.constant 0 : i32
    return %c0_i32, %c0_i32_0 : i32, i32
  }
  func.func @transform_17(%arg0: i32) -> (i32, i32) {
    %c0_i32 = arith.constant 0 : i32
    %c0_i32_0 = arith.constant 0 : i32
    %c0_i32_1 = arith.constant 0 : i32
    return %c0_i32, %c0_i32_0 : i32, i32
  }
  func.func @transform_18(%arg0: i32) -> (i32, i32) {
    %c0_i32 = arith.constant 0 : i32
    %c0_i32_0 = arith.constant 0 : i32
    %c0_i32_1 = arith.constant 0 : i32
    return %c0_i32, %c0_i32_0 : i32, i32
  }
  func.func @transform_19(%arg0: i32) -> (i32, i32) {
    %c0_i32 = arith.constant 0 : i32
    %c0_i32_0 = arith.constant 0 : i32
    %c0_i32_1 = arith.constant 0 : i32
    return %c0_i32, %c0_i32_0 : i32, i32
  }
  func.func @transform_20(%arg0: i32) -> (i32, i32) {
    %c0_i32 = arith.constant 0 : i32
    %c0_i32_0 = arith.constant 0 : i32
    %c0_i32_1 = arith.constant 0 : i32
    return %c0_i32, %c0_i32_0 : i32, i32
  }
  func.func @transform_21(%arg0: i32) -> (i32, i32) {
    %c0_i32 = arith.constant 0 : i32
    %c0_i32_0 = arith.constant 0 : i32
    return %arg0, %c0_i32 : i32, i32
  }
}

</mosaic_0001>

<bundles_post_ra>
// kernel: tpu_custom_call.1
= control target key start
LH: loop header
LB: loop body
LE: loop exit
PB: predicated region body
PF: predicated region fallthrough
CT: control target
= control target key end

     0   :  { %s3100_s0 = inlined_call_operand.vmem [shape: f32[2,6], index: 0, kind: input, shape index: {}]   ;;  %s3101_s1 = inlined_call_operand.vmem [shape: f32[16,5], index: 1, kind: input, shape index: {}]   ;;  %s3102_s2 = inlined_call_operand.vmem [shape: f32[16,3], index: 2, kind: input, shape index: {}]   ;;  %s3103_s3 = inlined_call_operand.vmem [shape: f32[16,3], index: 3, kind: input, shape index: {}]   ;;  %s3104_s4 = inlined_call_operand.vmem [shape: f32[16,16], index: 4, kind: input, shape index: {}]   ;;  %s3105_s5 = inlined_call_operand.hbm [shape: f32[16,16], index: 5, kind: input, shape index: {}]   ;;  %s3106_s6 = inlined_call_operand.vmem [shape: f32[5,32], index: 6, kind: input, shape index: {}]   ;;  %s3107_s7 = inlined_call_operand.hbm [shape: f32[3,32], index: 7, kind: input, shape index: {}]   ;;  %s3108_s8 = inlined_call_operand.hbm [shape: f32[1,32], index: 8, kind: input, shape index: {}]   ;;  %s3109_s9 = inlined_call_operand.vmem [shape: f32[6,32], index: 9, kind: input, shape index: {}]   ;;  %s3110_s10 = inlined_call_operand.vmem [shape: f32[1,32], index: 10, kind: input, shape index: {}]   ;;  %s3111_s11 = inlined_call_operand.vmem [shape: f32[32,192], index: 11, kind: input, shape index: {}]   ;;  %s3112_s12 = inlined_call_operand.vmem [shape: f32[1,192], index: 12, kind: input, shape index: {}]   ;;  %s3113_s13 = inlined_call_operand.vmem [shape: f32[64,192], index: 13, kind: input, shape index: {}]   ;;  %s3114_s14 = inlined_call_operand.vmem [shape: f32[1,192], index: 14, kind: input, shape index: {}]   ;;  %s3115_s15 = inlined_call_operand.vmem [shape: f32[64,33], index: 15, kind: input, shape index: {}]   ;;  %s3116_s16 = inlined_call_operand.vmem [shape: f32[1,33], index: 16, kind: input, shape index: {}]   ;;  %s3117_s17 = inlined_call_operand.vmem [shape: f32[2,16], index: 17, kind: input, shape index: {}]   ;;  %s3118_s18 = inlined_call_operand.vmem [shape: f32[32,4], index: 18, kind: input, shape index: {}]   ;;  %s3119_s19 = inlined_call_operand.vmem [shape: f32[32,4], index: 19, kind: input, shape index: {}]   ;;  %s3120_s20 = inlined_call_operand.vmem [shape: f32[1,4], index: 20, kind: input, shape index: {}]   ;;  %s3121_s21 = inlined_call_operand.hbm [shape: f32[2,4], index: 21, kind: output, shape index: {}]  }
   0x1   :  { %3127 = sst [smem:[#allocation13_spill]] %s3100_s0 }
   0x2   :  { %3128 = sst [smem:[#allocation14_spill]] %s3101_s1 }
   0x3   :  { %3129 = sst [smem:[#allocation15_spill]] %s3102_s2 }
   0x4   :  { %3130 = sst [smem:[#allocation16_spill]] %s3103_s3 }
   0x5   :  { %3131 = sst [smem:[#allocation17_spill]] %s3104_s4 }
   0x6   :  { %3132 = sst [smem:[#allocation18_spill]] %s3105_s5 }
   0x7   :  { %26 = vsyncpa [#allocation4], 0 }
   0x8   :  { %27 = vsyncpa [#allocation7], 0 }
   0x9   :  { %28 = vsyncpa [#allocation5], 0  ;;  %s2514_s2 = smov [#allocation6]   ;;  %s2515_s26 = smov [#allocation3]  }
   0xa   :  { %s59_s25 = sshll.u32 %s2514_s2, 4  ;;  %s44_s27 = sshll.u32 %s2515_s26, 4  ;;  %s60_s25 = int_to_ptr.vmem [resolvable:$true] %s59_s25  ;;  %s2637_s27 = int_to_ptr.vmem [resolvable:$true] %s44_s27 }
   0xb   :  { %s2420_s29 = scalar_lea.hbm %s3107_s7, 64 }
   0xc   :  { %p2421_p0 = scmp.ne.s32.totalorder %s3107_s7, %s2420_s29  ;;  %p2424_p1 = scmp.lt.u32.totalorder %s2420_s29, %s3107_s7 }
   0xe   :  { %p2426_p2 = pnand %p2424_p1, %p2421_p0 }
  0x10   :  { %2429 = shalt.err (!%p2426_p2)
}
  0x11   :  { %s2430_s22 = scalar_lea.vmem %s60_s25, 64  ;;  %p2435_p4 = scmp.lt.s32.totalorder %s60_s25, %s60_s25 }
  0x12   :  { %p2431_p3 = scmp.ne.s32.totalorder %s60_s25, %s2430_s22  ;;  %p2436_p5 = scmp.lt.s32.totalorder %s2430_s22, %s2430_s22 }
  0x14   :  { %p2437_p6 = por %p2436_p5, %p2435_p4 }
  0x16   :  { %p2438_p7 = pnand %p2437_p6, %p2431_p3 }
  0x18   :  { %2441 = shalt.err (!%p2438_p7)
}
  0x19   :  { %62 = dma.hbm_to_vmem [thread:$0]  %s3107_s7, 64, %s60_s25, [#allocation7]  }
  0x1a   :  { %s3133_s26 = sld [smem:[#allocation18_spill]] }
  0x20   :  { %s2442_s3 = scalar_lea.hbm %s3133_s26, 256 }
  0x21   :  { %p2443_p8 = scmp.ne.s32.totalorder %s3133_s26, %s2442_s3  ;;  %p2446_p9 = scmp.lt.u32.totalorder %s2442_s3, %s3133_s26 }
  0x23   :  { %p2448_p10 = pnand %p2446_p9, %p2443_p8 }
  0x25   :  { %2451 = shalt.err (!%p2448_p10)
}
  0x26   :  { %s2452_s30 = scalar_lea.vmem %s2637_s27, 256  ;;  %p2457_p12 = scmp.lt.s32.totalorder %s2637_s27, %s2637_s27 }
  0x27   :  { %p2453_p11 = scmp.ne.s32.totalorder %s2637_s27, %s2452_s30  ;;  %p2458_p13 = scmp.lt.s32.totalorder %s2452_s30, %s2452_s30 }
  0x29   :  { %p2459_p0 = por %p2458_p13, %p2457_p12 }
  0x2b   :  { %p2460_p1 = pnand %p2459_p0, %p2453_p11 }
  0x2d   :  { %2463 = shalt.err (!%p2460_p1)
}
  0x2e   :  { %s2516_s7 = smov 128   ;;  %s2517_s25 = smov 8  }
  0x2f   :  { %50 = dma.hbm_to_vmem [thread:$0]  %s3133_s26, 256, %s2637_s27, [#allocation4], %s2516_s7, %s2516_s7, %s2517_s25  }
  0x30   :  { %s2518_s23 = smov [#allocation8]   ;;  %s2464_s3 = scalar_lea.hbm %s3108_s8, 16 }
  0x31   :  { %s69_s1 = sshll.u32 %s2518_s23, 4  ;;  %p2465_p2 = scmp.ne.s32.totalorder %s3108_s8, %s2464_s3  ;;  %s70_s1 = int_to_ptr.vmem [resolvable:$true] %s69_s1 }
  0x32   :  { %p2468_p3 = scmp.lt.u32.totalorder %s2464_s3, %s3108_s8 }
  0x34   :  { %p2470_p4 = pnand %p2468_p3, %p2465_p2 }
  0x36   :  { %2473 = shalt.err (!%p2470_p4)
}
  0x37   :  { %s2474_s30 = scalar_lea.vmem %s70_s1, 16  ;;  %s2478_s27 = scalar_lea.vmem %s70_s1, 32 }
  0x38   :  { %p2475_p5 = scmp.ne.s32.totalorder %s70_s1, %s2474_s30  ;;  %p2479_p6 = scmp.lt.s32.totalorder %s70_s1, %s70_s1 }
  0x39   :  { %p2480_p7 = scmp.lt.s32.totalorder %s2478_s27, %s2474_s30 }
  0x3b   :  { %p2481_p8 = por %p2480_p7, %p2479_p6 }
  0x3d   :  { %p2482_p9 = pnand %p2481_p8, %p2475_p5 }
  0x3f   :  { %2485 = shalt.err (!%p2482_p9)
}
  0x40   :  { %72 = dma.hbm_to_vmem [thread:$0]  %s3108_s8, 16, %s70_s1, [#allocation7]  }
  0x41   :  { %2508 = dma.done.wait [#allocation4], 256  }
  0x42   :  { %2509 = vsyncadd [#allocation4], 4294967040 }
  0x43   :  { %2510 = dma.done.wait [#allocation7], 80  }
  0x44   :  { %2511 = vsyncadd [#allocation7], 4294967216  ;;  %vm110_vm0 = vcmask 130048   ;;  %s3134_s22 = sld [smem:[#allocation15_spill]]  ;;  %s3135_s28 = sld [smem:[#allocation16_spill]]  ;;  %v192_v6 = vld [vmem:[#allocation3] sm:$0xff] }
  0x45   :  { %s3136_s4 = sld [smem:[#allocation17_spill]]  ;;  %2086 = vmatprep.mubr.msk.f32.mxu1 %vm110_vm0, %v192_v6  ;;  %v193_v9 = vld [vmem:[#allocation3 + $0x8] sm:$0xff]  ;;  %v282_v10 = vld [vmem:[#allocation6] sm:$0x7]  ;;  %vm290_vm1 = vcmask 1042432   ;;  %vm376_vm2 = vcmask 1044480  }
  0x46   :  { %v281_v11 = vld [vmem:[%s3106_s6] sm:$0x1f]  ;;  %v2519_v12 = vmov 0.0   ;;  %vm477_vm3 = vcmask 1045504   ;;  %s3137_s24 = sld [smem:[#allocation13_spill]]  ;;  %vm473_vm4 = vcmask 48128  }
  0x47   :  { %v465_v13 = vld [vmem:[%s3109_s9] sm:$0x3f]  ;;  %v552_v15 = vld [vmem:[%s3111_s11 + $0x8] sm:$0xff]  ;;  %v554_v16 = vld [vmem:[%s3111_s11 + $0x18] sm:$0xff]  ;;  %vm2520_vm5 = vmmov 0   ;;  %vm283_vm6 = vcmask 23552  }
  0x48   :  { %v2167_v17 = vpack.c.bf16 %v554_v16, %v552_v15  ;;  %v551_v18 = vld [vmem:[%s3111_s11] sm:$0xff]  ;;  %v553_v19 = vld [vmem:[%s3111_s11 + $0x10] sm:$0xff]  ;;  %v656_v24 = vld [vmem:[%s3113_s13 + $0x8] sm:$0xff]  ;;  %s3138_s25 = sld [smem:[#allocation14_spill]]  ;;  %vm369_vm7 = vcmask 39936   ;;  %vm571_vm8 = vcmask 261120  }
  0x49   :  { %v2169_v20 = vpack.c.bf16 %v553_v19, %v551_v18  ;;  %v658_v25 = vld [vmem:[%s3113_s13 + $0x18] sm:$0xff]  ;;  %v655_v31 = vld [vmem:[%s3113_s13] sm:$0xff]  ;;  %v657_v32 = vld [vmem:[%s3113_s13 + $0x10] sm:$0xff]  ;;  %vm683_vm9 = vcmask 523264   ;;  %vm1103_vm10 = vcmask 517120   ;;  %vm786_vm11 = vcmask 523270  }
  0x4a   :  { %v108_v0 = vld [vmem:[%s3134_s22] sm:$0xff]  ;;  %v109_v1 = vld [vmem:[%s3134_s22 + $0x8] sm:$0xff]  ;;  %v2737_v30 = vpack.c.bf16 %v658_v25, %v656_v24  ;;  %v662_v34 = vld [vmem:[%s3113_s13 + $0x38] sm:$0xff]  ;;  %v2757_v36 = vpack.c.bf16 %v657_v32, %v655_v31  ;;  %vm1002_vm12 = vcmask 519170   ;;  %vm894_vm13 = vcmask 521220  }
  0x4b   :  { %v194_v2 = vld [vmem:[%s3135_s28] sm:$0xff]  ;;  %v2159_v3 = vpack.c.bf16 %v109_v1, %v108_v0  ;;  %v195_v4 = vld [vmem:[%s3135_s28 + $0x8] sm:$0xff]  ;;  %v661_v39 = vld [vmem:[%s3113_s13 + $0x30] sm:$0xff]  ;;  %vm1623_vm14 = vcmask 269568   ;;  %vm1976_vm15 = vcmask 25600  }
  0x4c   :  { %v106_v5 = vld [vmem:[%s3136_s4] sm:$0xff]  ;;  %v2163_v7 = vpack.c.bf16 %v195_v4, %v194_v2  ;;  %v107_v8 = vld [vmem:[%s3136_s4 + $0x8] sm:$0xff]  ;;  %v666_v41 = vld [vmem:[%s3113_s13 + $0x58] sm:$0xff]  ;;  %v561_v4 = vlaneseq }
  0x4d   :  { %2079 = vmatprep.mubr.msk.f32.mxu0 %vm110_vm0, %v106_v5  ;;  %2160 = vmatprep.subr.bf16.mxu0 %v2159_v3  ;;  %v464_v14 = vld [vmem:[%s3137_s24] sm:$0x3]  ;;  %v660_v33 = vld [vmem:[%s3113_s13 + $0x28] sm:$0xff]  ;;  %v665_v45 = vld [vmem:[%s3113_s13 + $0x50] sm:$0xff] }
  0x4e   :  { %2164 = vmatprep.subr.bf16.mxu1 %v2163_v7  ;;  %2162 = vmatpush3.bf16.msra.mxu0 %v2159_v3  ;;  %v279_v29 = vld [vmem:[%s3138_s25] sm:$0xff]  ;;  %v280_v35 = vld [vmem:[%s3138_s25 + $0x8] sm:$0xff]  ;;  %v2759_v37 = vpack.c.bf16 %v662_v34, %v660_v33  ;;  %v558_v48 = vld [vmem:[%s3111_s11 + $0x38] sm:$0xff]  ;;  %v562_v5 = vshrl.u32 %v561_v4, 7 }
  0x4f   :  { %2166 = vmatpush3.bf16.msra.mxu1 %v2163_v7  ;;  %2089 = vmatprep.subr.msk.mxu0 %vm290_vm1, %v282_v10  ;;  %v659_v38 = vld [vmem:[%s3113_s13 + $0x20] sm:$0xff]  ;;  %v664_v40 = vld [vmem:[%s3113_s13 + $0x48] sm:$0xff]  ;;  %v557_v51 = vld [vmem:[%s3111_s11 + $0x30] sm:$0xff] }
  0x50   :  { %2099 = vmatprep.subr.mxu1 %v2519_v12  ;;  %v2775_v42 = vpack.c.bf16 %v661_v39, %v659_v38  ;;  %v2779_v43 = vpack.c.bf16 %v666_v41, %v664_v40  ;;  %v663_v44 = vld [vmem:[%s3113_s13 + $0x40] sm:$0xff]  ;;  %v556_v47 = vld [vmem:[%s3111_s11 + $0x28] sm:$0xff]  ;;  %v670_v54 = vld [vmem:[%s3113_s13 + $0x78] sm:$0xff]  ;;  %v563_v7 = vsub.s32 0, %v562_v5 }
  0x51   :  { %2080 = vmatmul.mubr.msk.f32.vlgmr.msra.gmra.mrb[0].mxu0 %vm110_vm0, %v107_v8  ;;  %v2788_v46 = vpack.c.bf16 %v665_v45, %v663_v44  ;;  %v2171_v49 = vpack.c.bf16 %v558_v48, %v556_v47  ;;  %v555_v50 = vld [vmem:[%s3111_s11 + $0x20] sm:$0xff]  ;;  %v668_v52 = vld [vmem:[%s3113_s13 + $0x68] sm:$0xff]  ;;  %v669_v56 = vld [vmem:[%s3113_s13 + $0x70] sm:$0xff] }
  0x52   :  { %2087 = vmatmul.mubr.msk.f32.vlgmr.msra.gmra.mrb[0].mxu1 %vm110_vm0, %v193_v9  ;;  %2090 = vmatpush3.msk.msra.mxu0 %vm290_vm1, %v282_v10  ;;  %v2173_v53 = vpack.c.bf16 %v557_v51, %v555_v50  ;;  %v667_v55 = vld [vmem:[%s3113_s13 + $0x60] sm:$0xff]  ;;  %v2816_v57 = vpack.c.bf16 %v670_v54, %v668_v52  ;;  %v567_v9 = vsub.s32 1, %v562_v5 }
  0x53   :  { %2094 = vmatprep.subr.msk.mxu0 %vm376_vm2, %v281_v11  ;;  %2100 = vmatpush3.msk.msra.mxu1 %vm477_vm3, %v465_v13  ;;  %v2818_v58 = vpack.c.bf16 %v669_v56, %v667_v55  ;;  %v2004_v61 = vld [vmem:[#allocation8] ss:$0 sm:$0xff]  ;;  %v671_v6 = vld [vmem:[%s3114_s14] sm:$0x3] }
  0x54   :  { %2101 = vmatprep.mubr.msk.f32.mxu1 %vm2520_vm5, %v2519_v12  ;;  %2168 = vmatprep.subr.bf16.mxu1 %v2167_v17  ;;  %v559_v8 = vld [vmem:[%s3112_s12] sm:$0x3]  ;;  %v2860_v10 = vrot.slane %v671_v6, %v563_v7  ;;  %s2521_s12 = smov 64  }
  0x55   :  { %v568_v13 = vrot.slane %v559_v8, %v567_v9 }
  0x56   :  { %2102 = vmatmul.mubr.msk.f32.vlgmr.msra.gmra.mrb[2].mxu1 %vm473_vm4, %v464_v14 }
  0x57   :  { %642 = vmatprep.mubr.f32.mxu1 %v2519_v12  ;;  %2170 = vmatpush1.bf16.msra.mxu1 %v2169_v20 }
  0x58   :  { %2172 = vmatprep.subr.bf16.mxu1 %v2171_v49 }
  0x5b   :  { %2174 = vmatpush1.bf16.msra.mxu1 %v2173_v53 }
  0x5c   :  { %2192 = vmatprep.subr.bf16.mxu1 %v2737_v30 }
 0x124   :  { %v2081_v21 = vpop.f32.mrb[0].mxu0 }
 0x125   :  { %v2088_v22 = vpop.f32.mrb[0].mxu1  ;;  %v183_v23 = vpop.f32.mrb[1].mxu0 }
 0x126   :  { %v278_v26 = vsub.f32 %v2081_v21, %v2088_v22  ;;  %v268_v27 = vpop.f32.mrb[1].mxu1 }
 0x127   :  { %v277_v28 = vsub.f32 %v183_v23, %v268_v27  ;;  %v2870_v27 = vrot.slane %v671_v6, %v567_v9 }
 0x129   :  { %2091 = vmatprep.mubr.msk.f32.mxu0 %vm283_vm6, %v277_v28  ;;  %v2827_v59 = vpop.f32.mrb[2].mxu1 }
 0x12a   :  { %2092 = vmatmul.mubr.msk.f32.vlgmr.msra.gmra.mrb[2].mxu0 %vm283_vm6, %v278_v26  ;;  %v2103_v60 = vpop.f32.mrb[3].mxu1 }
 0x12b   :  { %2095 = vmatpush3.msk.msra.mxu0 %vm376_vm2, %v281_v11  ;;  %2096 = vmatprep.mubr.msk.f32.mxu0 %vm369_vm7, %v279_v29  ;;  %v564_v11 = vrot.slane %v559_v8, %v563_v7 }
 0x12c   :  { %2176 = vmatprep.subr.bf16.mxu0 %v2737_v30 }
 0x132   :  { %2097 = vmatmul.mubr.msk.f32.vlgmr.msra.gmra.mrb[2].mxu0 %vm369_vm7, %v280_v35 }
 0x133   :  { %2178 = vmatpush1.bf16.msra.mxu0 %v2757_v36  ;;  %751 = vmatprep.mubr.f32.mxu0 %v2519_v12 }
 0x134   :  { %2180 = vmatprep.subr.bf16.mxu0 %v2759_v37 }
 0x137   :  { %2182 = vmatpush1.bf16.msra.mxu0 %v2775_v42 }
 0x138   :  { %2184 = vmatprep.subr.bf16.mxu0 %v2779_v43 }
 0x13b   :  { %2186 = vmatpush1.bf16.msra.mxu0 %v2788_v46 }
 0x13c   :  { %2188 = vmatprep.subr.bf16.mxu0 %v2816_v57 }
 0x13f   :  { %2190 = vmatpush1.bf16.msra.mxu0 %v2818_v58 }
 0x140   :  { %2208 = vmatprep.subr.bf16.mxu0 %v2737_v30 }
 0x142   :  { %752 = vmatmul.mubr.f32.vlgmr.msra.gmra.mrb[4].mxu0 %v2519_v12 }
 0x143   :  { %2210 = vmatpush1.bf16.msra.mxu0 %v2757_v36  ;;  %965 = vmatprep.mubr.f32.mxu0 %v2519_v12 }
 0x144   :  { %2212 = vmatprep.subr.bf16.mxu0 %v2759_v37 }
 0x147   :  { %2214 = vmatpush1.bf16.msra.mxu0 %v2775_v42 }
 0x148   :  { %2216 = vmatprep.subr.bf16.mxu0 %v2779_v43 }
 0x14b   :  { %2218 = vmatpush1.bf16.msra.mxu0 %v2788_v46 }
 0x14c   :  { %2220 = vmatprep.subr.bf16.mxu0 %v2816_v57 }
 0x14f   :  { %2222 = vmatpush1.bf16.msra.mxu0 %v2818_v58 }
 0x150   :  { %2240 = vmatprep.subr.bf16.mxu0 %v2737_v30 }
 0x205   :  { %v2098_v62 = vpop.f32.mrb[2].mxu0 }
 0x206   :  { %v446_v63 = vpop.f32.mrb[3].mxu0  ;;  %v2842_v1 = vadd.f32 %v2098_v62, %v2004_v61 }
 0x207   :  { %v2836_v0 = vadd.f32 %v2004_v61, %v446_v63 }
 0x209   :  { %2008 = vmatmul.mubr.msk.f32.vlgmr.msra.gmra.mrb[4].mxu1 %vm571_vm8, %v2836_v0 }
 0x20a   :  { %648 = vmatprep.mubr.f32.mxu1 %v2519_v12  ;;  %2194 = vmatpush1.bf16.msra.mxu1 %v2757_v36 }
 0x20b   :  { %2196 = vmatprep.subr.bf16.mxu1 %v2759_v37 }
 0x20d   :  { %2009 = vmatmul.mubr.msk.f32.gmra.mrb[6].mxu1 %vm571_vm8, %v2842_v1 }
 0x20e   :  { %2198 = vmatpush1.bf16.msra.mxu1 %v2775_v42  ;;  %857 = vmatprep.mubr.f32.mxu1 %v2519_v12 }
 0x20f   :  { %2200 = vmatprep.subr.bf16.mxu1 %v2779_v43 }
 0x212   :  { %2202 = vmatpush1.bf16.msra.mxu1 %v2788_v46 }
 0x213   :  { %2204 = vmatprep.subr.bf16.mxu1 %v2816_v57 }
 0x215   :  { %v753_v2 = vpop.f32.mrb[4].mxu0 }
 0x216   :  { %2206 = vmatpush1.bf16.msra.mxu1 %v2818_v58  ;;  %v755_v3 = vpop.f32.mrb[5].mxu0  ;;  %v754_v14 = vadd.f32 %v753_v2, %v2860_v10 }
 0x217   :  { %2224 = vmatprep.subr.bf16.mxu1 %v2737_v30  ;;  %v756_v28 = vadd.f32 %v755_v3, %v2870_v27 }
 0x218   :  { %v759_v19 = vrot.slane %v754_v14, 2 }
 0x219   :  { %v769_v29 = vrot.slane %v756_v28, 2 }
 0x2dc   :  { %v644_v15 = vpop.f32.mrb[4].mxu1 }
 0x2dd   :  { %v2863_v16 = vadd.f32 %v644_v15, %v564_v11  ;;  %v646_v17 = vpop.f32.mrb[5].mxu1 }
 0x2de   :  { %v2865_v18 = vadd.f32 %v646_v17, %v568_v13 }
 0x2e0   :  { %v650_v20 = vpop.f32.mrb[6].mxu1 }
 0x2e1   :  { %v2867_v21 = vadd.f32 %v650_v20, %v564_v11  ;;  %v652_v22 = vpop.f32.mrb[7].mxu1 }
 0x2e2   :  { %v2873_v32 = vadd.f32 %v652_v22, %v568_v13 }
 0x2e3   :  { %v761_v23 = vadd.f32 %v759_v19, %v2867_v21 }
 0x2e5   :  { %v2010_v24 = vmul.f32 -1.442695, %v761_v23 }
 0x2e7   :  { %2362 = vpow2.f32 %v2010_v24 }
 0x2f1   :  { %v2363_v25 = vpop.eup %2362 }
 0x2f2   :  { %v765_v26 = vadd.f32 1.0, %v2363_v25 }
 0x2f4   :  { %2364 = vrcp.f32 %v765_v26 }
 0x2fe   :  { %v2365_v31 = vpop.eup %2364 }
 0x2ff   :  { %v771_v33 = vmul.f32 %v2365_v31, %v769_v29  ;;  %v774_v38 = vsub.f32 1.0, %v2365_v31  ;;  %v780_v40 = vmul.f32 0.0, %v2365_v31 }
 0x301   :  { %v772_v34 = vadd.f32 %v771_v33, %v2873_v32 }
 0x303   :  { %2366 = vtanh.f32 %v772_v34 }
 0x30d   :  { %v2367_v35 = vpop.eup %2366 }
 0x30e   :  { %776 = vrot.lane.b32.xlu0 %v2367_v35, %s2521_s12 }
 0x380   :  { %v777_v39 = vpop.permute.xlu0 %776 }
 0x381   :  { %v779_v41 = vmul.f32 %v777_v39, %v774_v38 }
 0x383   :  { %v2877_v44 = vadd.f32 %v780_v40, %v779_v41 }
 0x385   :  { %v788_v45 = vrot.slane %v2877_v44, 6  ;;  %v886_v4 = vrot.slane %v2877_v44, 2 }
 0x387   :  { %789 = vrot.lane.b32.xlu0 %v788_v45, %s2521_s12 }
 0x3f9   :  { %v790_v47 = vpop.permute.xlu0 %789 }
 0x3fa   :  { %2011 = vmatmul.mubr.msk.f32.vlgmr.msra.gmra.mrb[8].mxu1 %vm683_vm9, %v790_v47 }
 0x3fb   :  { %2226 = vmatpush1.bf16.msra.mxu1 %v2757_v36  ;;  %1073 = vmatprep.mubr.f32.mxu1 %v2519_v12 }
 0x3fc   :  { %2228 = vmatprep.subr.bf16.mxu1 %v2759_v37 }
 0x3ff   :  { %2230 = vmatpush1.bf16.msra.mxu1 %v2775_v42 }
 0x400   :  { %2232 = vmatprep.subr.bf16.mxu1 %v2779_v43 }
 0x403   :  { %2234 = vmatpush1.bf16.msra.mxu1 %v2788_v46 }
 0x404   :  { %2236 = vmatprep.subr.bf16.mxu1 %v2816_v57 }
 0x407   :  { %2238 = vmatpush1.bf16.msra.mxu1 %v2818_v58 }
 0x408   :  { %2256 = vmatprep.subr.bf16.mxu1 %v2737_v30 }
 0x4cd   :  { %v859_v48 = vpop.f32.mrb[8].mxu1 }
 0x4ce   :  { %v860_v49 = vadd.f32 %v859_v48, %v2860_v10  ;;  %v861_v50 = vpop.f32.mrb[9].mxu1 }
 0x4cf   :  { %v862_v56 = vadd.f32 %v861_v50, %v2870_v27 }
 0x4d0   :  { %v865_v51 = vrot.slane %v860_v49, 4 }
 0x4d1   :  { %v875_v60 = vrot.slane %v862_v56, 4 }
 0x4d2   :  { %v867_v52 = vadd.f32 %v865_v51, %v2867_v21 }
 0x4d4   :  { %v2012_v53 = vmul.f32 -1.442695, %v867_v52 }
 0x4d6   :  { %2368 = vpow2.f32 %v2012_v53 }
 0x4e0   :  { %v2369_v54 = vpop.eup %2368 }
 0x4e1   :  { %v871_v55 = vadd.f32 1.0, %v2369_v54 }
 0x4e3   :  { %2370 = vrcp.f32 %v871_v55 }
 0x4ed   :  { %v2371_v61 = vpop.eup %2370 }
 0x4ee   :  { %v877_v62 = vmul.f32 %v2371_v61, %v875_v60  ;;  %v880_v3 = vsub.f32 1.0, %v2371_v61  ;;  %v888_v6 = vmul.f32 %v2371_v61, %v886_v4 }
 0x4f0   :  { %v878_v63 = vadd.f32 %v877_v62, %v2873_v32 }
 0x4f2   :  { %2372 = vtanh.f32 %v878_v63 }
 0x4fc   :  { %v2373_v2 = vpop.eup %2372 }
 0x4fd   :  { %882 = vrot.lane.b32.xlu1 %v2373_v2, %s2521_s12 }
 0x56f   :  { %v883_v5 = vpop.permute.xlu1 %882 }
 0x570   :  { %v885_v7 = vmul.f32 %v883_v5, %v880_v3 }
 0x572   :  { %v2897_v8 = vadd.f32 %v888_v6, %v885_v7 }
 0x574   :  { %v896_v9 = vrot.slane %v2897_v8, 4  ;;  %v994_v34 = vrot.slane %v2897_v8, 2 }
 0x576   :  { %897 = vrot.lane.b32.xlu1 %v896_v9, %s2521_s12 }
 0x5e8   :  { %v898_v11 = vpop.permute.xlu1 %897 }
 0x5e9   :  { %2013 = vmatmul.mubr.msk.f32.vlgmr.msra.gmra.mrb[6].mxu0 %vm683_vm9, %v898_v11 }
 0x5ea   :  { %2242 = vmatpush1.bf16.msra.mxu0 %v2757_v36  ;;  %1171 = vmatprep.mubr.f32.mxu0 %v2519_v12 }
 0x5eb   :  { %2244 = vmatprep.subr.bf16.mxu0 %v2759_v37 }
 0x5ee   :  { %2246 = vmatpush1.bf16.msra.mxu0 %v2775_v42 }
 0x5ef   :  { %2248 = vmatprep.subr.bf16.mxu0 %v2779_v43 }
 0x5f2   :  { %2250 = vmatpush1.bf16.msra.mxu0 %v2788_v46 }
 0x5f3   :  { %2252 = vmatprep.subr.bf16.mxu0 %v2816_v57 }
 0x5f6   :  { %2254 = vmatpush1.bf16.msra.mxu0 %v2818_v58 }
 0x5f7   :  { %2272 = vmatprep.subr.bf16.mxu0 %v2737_v30 }
 0x6bc   :  { %v967_v13 = vpop.f32.mrb[6].mxu0 }
 0x6bd   :  { %v968_v14 = vadd.f32 %v967_v13, %v2860_v10  ;;  %v969_v15 = vpop.f32.mrb[7].mxu0 }
 0x6be   :  { %v970_v24 = vadd.f32 %v969_v15, %v2870_v27 }
 0x6bf   :  { %v973_v17 = vrot.slane %v968_v14, 6 }
 0x6c0   :  { %v983_v25 = vrot.slane %v970_v24, 6 }
 0x6c1   :  { %v975_v19 = vadd.f32 %v973_v17, %v2867_v21 }
 0x6c3   :  { %v2014_v20 = vmul.f32 -1.442695, %v975_v19 }
 0x6c5   :  { %2374 = vpow2.f32 %v2014_v20 }
 0x6cf   :  { %v2375_v22 = vpop.eup %2374 }
 0x6d0   :  { %v979_v23 = vadd.f32 1.0, %v2375_v22 }
 0x6d2   :  { %2376 = vrcp.f32 %v979_v23 }
 0x6dc   :  { %v2377_v26 = vpop.eup %2376 }
 0x6dd   :  { %v985_v28 = vmul.f32 %v2377_v26, %v983_v25  ;;  %v988_v33 = vsub.f32 1.0, %v2377_v26  ;;  %v996_v38 = vmul.f32 %v2377_v26, %v994_v34 }
 0x6df   :  { %v986_v29 = vadd.f32 %v985_v28, %v2873_v32 }
 0x6e1   :  { %2378 = vtanh.f32 %v986_v29 }
 0x6eb   :  { %v2379_v31 = vpop.eup %2378 }
 0x6ec   :  { %990 = vrot.lane.b32.xlu0 %v2379_v31, %s2521_s12 }
 0x75e   :  { %v991_v35 = vpop.permute.xlu0 %990 }
 0x75f   :  { %v993_v39 = vmul.f32 %v991_v35, %v988_v33 }
 0x761   :  { %v2917_v40 = vadd.f32 %v996_v38, %v993_v39 }
 0x763   :  { %v1004_v41 = vrot.slane %v2917_v40, 2 }
 0x765   :  { %1005 = vrot.lane.b32.xlu1 %v1004_v41, %s2521_s12 }
 0x7d7   :  { %v1006_v45 = vpop.permute.xlu1 %1005 }
 0x7d8   :  { %2015 = vmatmul.mubr.msk.f32.vlgmr.msra.gmra.mrb[10].mxu1 %vm683_vm9, %v1006_v45 }
 0x7d9   :  { %2258 = vmatpush1.bf16.msra.mxu1 %v2757_v36  ;;  %1278 = vmatprep.mubr.f32.mxu1 %v2519_v12 }
 0x7da   :  { %2260 = vmatprep.subr.bf16.mxu1 %v2759_v37 }
 0x7dd   :  { %2262 = vmatpush1.bf16.msra.mxu1 %v2775_v42 }
 0x7de   :  { %2264 = vmatprep.subr.bf16.mxu1 %v2779_v43 }
 0x7e1   :  { %2266 = vmatpush1.bf16.msra.mxu1 %v2788_v46 }
 0x7e2   :  { %2268 = vmatprep.subr.bf16.mxu1 %v2816_v57 }
 0x7e5   :  { %2270 = vmatpush1.bf16.msra.mxu1 %v2818_v58 }
 0x7e6   :  { %2288 = vmatprep.subr.bf16.mxu1 %v2737_v30 }
 0x8ab   :  { %v1075_v47 = vpop.f32.mrb[10].mxu1 }
 0x8ac   :  { %v1076_v48 = vadd.f32 %v1075_v47, %v2860_v10  ;;  %v1077_v49 = vpop.f32.mrb[11].mxu1 }
 0x8ad   :  { %v1078_v54 = vadd.f32 %v1077_v49, %v2870_v27 }
 0x8ae   :  { %v1080_v50 = vadd.f32 %v1076_v48, %v2867_v21 }
 0x8b0   :  { %v2016_v51 = vmul.f32 -1.442695, %v1080_v50 }
 0x8b2   :  { %2380 = vpow2.f32 %v2016_v51 }
 0x8bc   :  { %v2381_v52 = vpop.eup %2380 }
 0x8bd   :  { %v1084_v53 = vadd.f32 1.0, %v2381_v52 }
 0x8bf   :  { %2382 = vrcp.f32 %v1084_v53 }
 0x8c9   :  { %v2383_v55 = vpop.eup %2382 }
 0x8ca   :  { %v1087_v56 = vmul.f32 %v2383_v55, %v1078_v54  ;;  %v1090_v30 = vsub.f32 1.0, %v2383_v55  ;;  %v1097_v63 = vmul.f32 %v2383_v55, %v1004_v41 }
 0x8cc   :  { %v1088_v60 = vadd.f32 %v1087_v56, %v2873_v32 }
 0x8ce   :  { %2384 = vtanh.f32 %v1088_v60 }
 0x8d8   :  { %v2385_v61 = vpop.eup %2384 }
 0x8d9   :  { %1092 = vrot.lane.b32.xlu0 %v2385_v61, %s2521_s12 }
 0x94b   :  { %v1093_v62 = vpop.permute.xlu0 %1092 }
 0x94c   :  { %v1095_v2 = vmul.f32 %v1093_v62, %v1090_v30 }
 0x94e   :  { %v1098_v21 = vadd.f32 %v1097_v63, %v1095_v2 }
 0x950   :  { %1100 = vrot.lane.b32.xlu1 %v1098_v21, %s2521_s12  ;;  %v1200_v15 = vrot.slane %v1098_v21, 2 }
 0x9c2   :  { %v1101_v3 = vpop.permute.xlu1 %1100 }
 0x9c3   :  { %1104 = vst.msk [vmem:[#allocation2 + $0x8] sm:$0x3] %vm1103_vm10, %v1101_v3  ;;  %2017 = vmatmul.mubr.msk.f32.vlgmr.msra.gmra.mrb[8].mxu0 %vm683_vm9, %v1101_v3 }
 0x9c4   :  { %2274 = vmatpush1.bf16.msra.mxu0 %v2757_v36  ;;  %1385 = vmatprep.mubr.f32.mxu0 %v2519_v12 }
 0x9c5   :  { %2276 = vmatprep.subr.bf16.mxu0 %v2759_v37 }
 0x9c8   :  { %2278 = vmatpush1.bf16.msra.mxu0 %v2775_v42 }
 0x9c9   :  { %2280 = vmatprep.subr.bf16.mxu0 %v2779_v43 }
 0x9cc   :  { %2282 = vmatpush1.bf16.msra.mxu0 %v2788_v46 }
 0x9cd   :  { %2284 = vmatprep.subr.bf16.mxu0 %v2816_v57 }
 0x9d0   :  { %2286 = vmatpush1.bf16.msra.mxu0 %v2818_v58 }
 0xa96   :  { %v1173_v32 = vpop.f32.mrb[8].mxu0 }
 0xa97   :  { %v1174_v4 = vadd.f32 %v1173_v32, %v2860_v10  ;;  %v1175_v5 = vpop.f32.mrb[9].mxu0 }
 0xa98   :  { %v1176_v14 = vadd.f32 %v1175_v5, %v2870_v27 }
 0xa99   :  { %v1179_v6 = vrot.slane %v1174_v4, 2 }
 0xa9a   :  { %v1189_v17 = vrot.slane %v1176_v14, 2 }
 0xa9b   :  { %v1181_v7 = vadd.f32 %v1179_v6, %v2863_v16 }
 0xa9d   :  { %v2018_v9 = vmul.f32 -1.442695, %v1181_v7 }
 0xa9f   :  { %2386 = vpow2.f32 %v2018_v9 }
 0xaa9   :  { %v2387_v11 = vpop.eup %2386 }
 0xaaa   :  { %v1185_v13 = vadd.f32 1.0, %v2387_v11 }
 0xaac   :  { %2388 = vrcp.f32 %v1185_v13 }
 0xab6   :  { %v2389_v19 = vpop.eup %2388 }
 0xab7   :  { %v1191_v20 = vmul.f32 %v2389_v19, %v1189_v17  ;;  %v1202_v22 = vmul.f32 %v2389_v19, %v1200_v15  ;;  %v1194_v25 = vsub.f32 1.0, %v2389_v19 }
 0xab9   :  { %v1192_v23 = vadd.f32 %v1191_v20, %v2865_v18 }
 0xabb   :  { %2390 = vtanh.f32 %v1192_v23 }
 0xac5   :  { %v2391_v24 = vpop.eup %2390 }
 0xac6   :  { %1196 = vrot.lane.b32.xlu0 %v2391_v24, %s2521_s12 }
 0xb38   :  { %v1197_v26 = vpop.permute.xlu0 %1196 }
 0xb39   :  { %v1199_v28 = vmul.f32 %v1197_v26, %v1194_v25 }
 0xb3b   :  { %v2952_v29 = vadd.f32 %v1202_v22, %v1199_v28 }
 0xb3d   :  { %v1209_v31 = vrot.slane %v2952_v29, 6  ;;  %v1307_v49 = vrot.slane %v2952_v29, 2 }
 0xb3f   :  { %1210 = vrot.lane.b32.xlu1 %v1209_v31, %s2521_s12 }
 0xbb1   :  { %v1211_v33 = vpop.permute.xlu1 %1210 }
 0xbb2   :  { %2019 = vmatmul.mubr.msk.f32.vlgmr.msra.gmra.mrb[12].mxu1 %vm683_vm9, %v1211_v33 }
 0xbb3   :  { %2290 = vmatpush1.bf16.msra.mxu1 %v2757_v36  ;;  %1492 = vmatprep.mubr.f32.mxu1 %v2519_v12 }
 0xbb4   :  { %2292 = vmatprep.subr.bf16.mxu1 %v2759_v37 }
 0xbb7   :  { %2294 = vmatpush1.bf16.msra.mxu1 %v2775_v42 }
 0xbb8   :  { %2296 = vmatprep.subr.bf16.mxu1 %v2779_v43 }
 0xbbb   :  { %2298 = vmatpush1.bf16.msra.mxu1 %v2788_v46 }
 0xbbc   :  { %2300 = vmatprep.subr.bf16.mxu1 %v2816_v57 }
 0xbbf   :  { %2302 = vmatpush1.bf16.msra.mxu1 %v2818_v58 }
 0xc85   :  { %v1280_v34 = vpop.f32.mrb[12].mxu1 }
 0xc86   :  { %v1281_v35 = vadd.f32 %v1280_v34, %v2860_v10  ;;  %v1282_v38 = vpop.f32.mrb[13].mxu1 }
 0xc87   :  { %v1283_v42 = vadd.f32 %v1282_v38, %v2870_v27 }
 0xc88   :  { %v1286_v39 = vrot.slane %v1281_v35, 4 }
 0xc89   :  { %v1296_v43 = vrot.slane %v1283_v42, 4  ;;  %v1530_v42 = vld [vmem:[%s3115_s15 + $0x28] sm:$0xff] }
 0xc8a   :  { %v1288_v36 = vadd.f32 %v1286_v39, %v2863_v16 }
 0xc8c   :  { %v2020_v41 = vmul.f32 -1.442695, %v1288_v36  ;;  %v1525_v36 = vld [vmem:[%s3115_s15] sm:$0xff] }
 0xc8e   :  { %2392 = vpow2.f32 %v2020_v41 }
 0xc98   :  { %v2393_v37 = vpop.eup %2392 }
 0xc99   :  { %v1292_v45 = vadd.f32 1.0, %v2393_v37 }
 0xc9b   :  { %2394 = vrcp.f32 %v1292_v45  ;;  %v1529_v45 = vld [vmem:[%s3115_s15 + $0x20] sm:$0xff] }
 0xca5   :  { %v2395_v46 = vpop.eup %2394 }
 0xca6   :  { %v1298_v47 = vmul.f32 %v2395_v46, %v1296_v43  ;;  %v1301_v48 = vsub.f32 1.0, %v2395_v46  ;;  %v1309_v51 = vmul.f32 %v2395_v46, %v1307_v49  ;;  %v2311_v43 = vpack.c.bf16 %v1530_v42, %v1529_v45  ;;  %v1531_v46 = vld [vmem:[%s3115_s15 + $0x30] sm:$0xff] }
 0xca8   :  { %v1299_v57 = vadd.f32 %v1298_v47, %v2865_v18  ;;  %v1532_v47 = vld [vmem:[%s3115_s15 + $0x38] sm:$0xff] }
 0xcaa   :  { %2396 = vtanh.f32 %v1299_v57  ;;  %v2315_v57 = vpack.c.bf16 %v1532_v47, %v1531_v46  ;;  %v1819_v47 = vld [vmem:[%s3119_s19 + $0x8] sm:$0xff] }
 0xcb4   :  { %v2397_v58 = vpop.eup %2396 }
 0xcb5   :  { %1303 = vrot.lane.b32.xlu0 %v2397_v58, %s2521_s12 }
 0xd27   :  { %v1304_v50 = vpop.permute.xlu0 %1303 }
 0xd28   :  { %v1306_v52 = vmul.f32 %v1304_v50, %v1301_v48 }
 0xd2a   :  { %v2971_v53 = vadd.f32 %v1309_v51, %v1306_v52  ;;  %v2522_v51 = vmov 0.0|0.0  }
 0xd2b   :  { %2319 = vmatprep.subr.bf16.mxu1 %v2522_v51 }
 0xd2c   :  { %v1316_v54 = vrot.slane %v2971_v53, 4  ;;  %v1414_v11 = vrot.slane %v2971_v53, 2 }
 0xd2e   :  { %1317 = vrot.lane.b32.xlu1 %v1316_v54, %s2521_s12 }
 0xda0   :  { %v1318_v55 = vpop.permute.xlu1 %1317 }
 0xda1   :  { %2021 = vmatmul.mubr.msk.f32.vlgmr.msra.gmra.mrb[10].mxu0 %vm683_vm9, %v1318_v55 }
 0xe74   :  { %v1387_v56 = vpop.f32.mrb[10].mxu0 }
 0xe75   :  { %v1388_v60 = vadd.f32 %v1387_v56, %v2860_v10  ;;  %v1389_v61 = vpop.f32.mrb[11].mxu0  ;;  %v1814_v56 = vld [vmem:[%s3118_s18] sm:$0xff] }
 0xe76   :  { %v1390_v3 = vadd.f32 %v1389_v61, %v2870_v27 }
 0xe77   :  { %v1393_v30 = vrot.slane %v1388_v60, 6  ;;  %v1815_v60 = vld [vmem:[%s3118_s18 + $0x8] sm:$0xff] }
 0xe78   :  { %v1403_v32 = vrot.slane %v1390_v3, 6 }
 0xe79   :  { %v1395_v62 = vadd.f32 %v1393_v30, %v2863_v16  ;;  %v2332_v30 = vpack.c.bf16 %v1815_v60, %v1814_v56 }
 0xe7b   :  { %v2022_v63 = vmul.f32 -1.442695, %v1395_v62  ;;  %v1817_v62 = vld [vmem:[%s3118_s18 + $0x18] sm:$0xff] }
 0xe7d   :  { %2398 = vpow2.f32 %v2022_v63 }
 0xe87   :  { %v2399_v2 = vpop.eup %2398 }
 0xe88   :  { %v1399_v21 = vadd.f32 1.0, %v2399_v2 }
 0xe8a   :  { %2400 = vrcp.f32 %v1399_v21  ;;  %v2005_v21 = vld [vmem:[%s3110_s10] ss:$0 sm:$0xff] }
 0xe8b   :  { %v548_v3 = vadd.f32 %v2005_v21, %v2827_v59 }
 0xe94   :  { %v2401_v4 = vpop.eup %2400 }
 0xe95   :  { %v1405_v5 = vmul.f32 %v2401_v4, %v1403_v32  ;;  %v1408_v9 = vsub.f32 1.0, %v2401_v4  ;;  %v1416_v14 = vmul.f32 %v2401_v4, %v1414_v11  ;;  %v2025_v32 = vld [vmem:[%s3116_s16] ss:$0 sm:$0xff]  ;;  %s2524_s16 = smov 96  }
 0xe97   :  { %v1406_v6 = vadd.f32 %v1405_v5, %v2865_v18 }
 0xe99   :  { %2402 = vtanh.f32 %v1406_v6 }
 0xea3   :  { %v2403_v7 = vpop.eup %2402 }
 0xea4   :  { %1410 = vrot.lane.b32.xlu0 %v2403_v7, %s2521_s12 }
 0xf16   :  { %v1411_v13 = vpop.permute.xlu0 %1410 }
 0xf17   :  { %v1413_v15 = vmul.f32 %v1411_v13, %v1408_v9 }
 0xf19   :  { %v1417_v17 = vadd.f32 %v1416_v14, %v1413_v15 }
 0xf1b   :  { %v1423_v19 = vrot.slane %v1417_v17, 2 }
 0xf1d   :  { %1424 = vrot.lane.b32.xlu1 %v1423_v19, %s2521_s12 }
 0xf21   :  { %1205 = vrot.lane.b32.xlu1 %v2952_v29, %s2521_s12 }
 0xf25   :  { %1419 = vrot.lane.b32.xlu1 %v1417_v17, %s2521_s12  ;;  %v2523_v17 = vmov 32  }
 0xf26   :  { %2354 = vset.pattern.permute.xlu1 %v2523_v17 }
 0xf29   :  { %783 = vrot.lane.b32.xlu1 %v2877_v44, %s2521_s12 }
 0xf2d   :  { %999 = vrot.lane.b32.xlu1 %v2917_v40, %s2521_s12 }
 0xf8f   :  { %v1425_v20 = vpop.permute.xlu1 %1424 }
 0xf90   :  { %2023 = vmatmul.mubr.msk.f32.vlgmr.msra.gmra.mrb[14].mxu1 %vm683_vm9, %v1425_v20 }
 0xf91   :  { %2127 = vmatprep.mubr.msk.f32.mxu1 %vm2520_vm5, %v2519_v12 }
 0xf93   :  { %v1206_v22 = vpop.permute.xlu1 %1205 }
 0xf94   :  { %1208 = vst.msk [vmem:[#allocation2] sm:$0xc0] %vm786_vm11, %v1206_v22 }
 0xf97   :  { %v1420_v23 = vpop.permute.xlu1 %1419 }
 0xf98   :  { %1422 = vst.msk [vmem:[#allocation2] sm:$0xc] %vm1002_vm12, %v1420_v23 }
 0xf9b   :  { %v784_v24 = vpop.permute.xlu1 %783 }
 0xf9c   :  { %787 = vst.msk [vmem:[#allocation2 + $0x8] sm:$0xc0] %vm786_vm11, %v784_v24 }
 0xf9f   :  { %v1000_v25 = vpop.permute.xlu1 %999 }
 0xfa0   :  { %1003 = vst.msk [vmem:[#allocation2 + $0x8] sm:$0xc] %vm1002_vm12, %v1000_v25 }
0x1063   :  { %v1494_v44 = vpop.f32.mrb[14].mxu1 }
0x1064   :  { %v1495_v26 = vadd.f32 %v1494_v44, %v2860_v10  ;;  %v1496_v40 = vpop.f32.mrb[15].mxu1  ;;  %v1526_v10 = vld [vmem:[%s3115_s15 + $0x8] sm:$0xff] }
0x1065   :  { %v1497_v34 = vadd.f32 %v1496_v40, %v2870_v27  ;;  %v2303_v41 = vpack.c.bf16 %v1526_v10, %v1525_v36  ;;  %v1528_v27 = vld [vmem:[%s3115_s15 + $0x18] sm:$0xff] }
0x1066   :  { %v1499_v28 = vadd.f32 %v1495_v26, %v2863_v16  ;;  %v1527_v16 = vld [vmem:[%s3115_s15 + $0x10] sm:$0xff] }
0x1067   :  { %v2307_v37 = vpack.c.bf16 %v1528_v27, %v1527_v16  ;;  %2304 = vmatprep.subr.bf16.mxu0 %v2303_v41 }
0x1068   :  { %v2024_v29 = vmul.f32 -1.442695, %v1499_v28  ;;  %2306 = vmatpush3.bf16.msra.mxu0 %v2303_v41 }
0x1069   :  { %2308 = vmatprep.subr.bf16.mxu0 %v2307_v37 }
0x106a   :  { %2404 = vpow2.f32 %v2024_v29 }
0x106c   :  { %2310 = vmatpush3.bf16.msra.mxu0 %v2307_v37 }
0x106d   :  { %2312 = vmatprep.subr.bf16.mxu0 %v2311_v43 }
0x1070   :  { %2314 = vmatpush3.bf16.msra.mxu0 %v2311_v43  ;;  %v1657_v43 = vld [vmem:[%s3117_s17] sm:$0x3] }
0x1071   :  { %2316 = vmatprep.subr.bf16.mxu0 %v2315_v57 }
0x1074   :  { %v2405_v31 = vpop.eup %2404  ;;  %2318 = vmatpush3.bf16.msra.mxu0 %v2315_v57  ;;  %v1820_v57 = vld [vmem:[%s3119_s19 + $0x10] sm:$0xff] }
0x1075   :  { %v1503_v33 = vadd.f32 1.0, %v2405_v31  ;;  %2331 = vmatprep.subr.bf16.mxu0 %v2522_v51 }
0x1077   :  { %2406 = vrcp.f32 %v1503_v33 }
0x1081   :  { %v2407_v35 = vpop.eup %2406 }
0x1082   :  { %v1506_v38 = vmul.f32 %v2407_v35, %v1497_v34  ;;  %v1509_v58 = vsub.f32 1.0, %v2407_v35  ;;  %v1516_v49 = vmul.f32 %v2407_v35, %v1423_v19 }
0x1084   :  { %v1507_v39 = vadd.f32 %v1506_v38, %v2865_v18 }
0x1086   :  { %2408 = vtanh.f32 %v1507_v39 }
0x1090   :  { %v2409_v18 = vpop.eup %2408 }
0x1091   :  { %1511 = vrot.lane.b32.xlu0 %v2409_v18, %s2521_s12 }
0x1095   :  { %1312 = vrot.lane.b32.xlu0 %v2971_v53, %s2521_s12 }
0x1103   :  { %v1512_v48 = vpop.permute.xlu0 %1511 }
0x1104   :  { %v1514_v50 = vmul.f32 %v1512_v48, %v1509_v58 }
0x1106   :  { %v1517_v52 = vadd.f32 %v1516_v49, %v1514_v50 }
0x1107   :  { %v1313_v53 = vpop.permute.xlu0 %1312 }
0x1108   :  { %1315 = vst.msk [vmem:[#allocation2] sm:$0x30] %vm894_vm13, %v1313_v53  ;;  %1519 = vrot.lane.b32.xlu0 %v1517_v52, %s2521_s12 }
0x110c   :  { %891 = vrot.lane.b32.xlu0 %v2897_v8, %s2521_s12  ;;  %v1816_v8 = vld [vmem:[%s3118_s18 + $0x10] sm:$0xff] }
0x110d   :  { %v2335_v2 = vpack.c.bf16 %v1817_v62, %v1816_v8 }
0x117a   :  { %v1520_v54 = vpop.permute.xlu0 %1519 }
0x117b   :  { %1522 = vst.msk [vmem:[#allocation2] sm:$0x3] %vm1103_vm10, %v1520_v54 }
0x117e   :  { %v892_v55 = vpop.permute.xlu0 %891 }
0x117f   :  { %895 = vst.msk [vmem:[#allocation2 + $0x8] sm:$0x30] %vm894_vm13, %v892_v55 }
0x1182   :  { %v1523_v61 = vld [vmem:[#allocation2] sm:$0xff] }
0x1183   :  { %2120 = vmatprep.mubr.msk.f32.mxu0 %vm683_vm9, %v1523_v61  ;;  %v2032_v61 = vld [vmem:[%s3120_s20] ss:$0 sm:$0xff] }
0x1186   :  { %v1524_v63 = vld [vmem:[#allocation2 + $0x8] sm:$0xff] }
0x1187   :  { %2121 = vmatmul.mubr.msk.f32.vlgmr.msra.gmra.mrb[12].mxu0 %vm683_vm9, %v1524_v63 }
0x1188   :  { %2333 = vmatpush3.bf16.msra.mxu0 %v2332_v30  ;;  %2156 = vmatprep.mubr.msk.f32.mxu0 %vm2520_vm5, %v2519_v12 }
0x1189   :  { %2334 = vmatprep.subr.bf16.mxu0 %v2522_v51 }
0x118c   :  { %2336 = vmatpush3.bf16.msra.mxu0 %v2335_v2 }
0x118f   :  { %2157 = vmatmul.mubr.msk.f32.vlgmr.msra.gmra.mrb[14].mxu0 %vm571_vm8, %v548_v3 }
0x125a   :  { %v2122_v4 = vpop.f32.mrb[12].mxu0 }
0x125b   :  { %v1618_v5 = vadd.f32 %v2122_v4, %v2025_v32  ;;  %v1612_v6 = vpop.f32.mrb[13].mxu0 }
0x125c   :  { %v1613_v7 = vadd.f32 %v2025_v32, %v1612_v6 }
0x125d   :  { %v1625_v9 = vsel %vm1623_vm14, %v1618_v5, -inf }
0x125e   :  { %v1624_v11 = vsel %vm1623_vm14, %v1613_v7, -inf }
0x125f   :  { %v1626_v13 = vmax.f32 %v1624_v11, %v1625_v9 }
0x1261   :  { %1627 = vmax.xlane.f32.xlu0 %v1626_v13 }
0x1262   :  { %v3055_v14 = vpop.f32.mrb[14].mxu0 }
0x1263   :  { %v2158_v15 = vpop.f32.mrb[15].mxu0 }
0x12ee   :  { %v1628_v59 = vpop.xlane.xlu0 %1627 }
0x12ef   :  { %v1629_v19 = vrot.slane %v1628_v59, 4 }
0x12f1   :  { %v1630_v20 = vmax.f32 %v1628_v59, %v1629_v19 }
0x12f3   :  { %v1631_v22 = vrot.slane %v1630_v20, 2 }
0x12f5   :  { %v1632_v23 = vmax.f32 %v1630_v20, %v1631_v22 }
0x12f7   :  { %v1633_v24 = vrot.slane %v1632_v23, 1 }
0x12f9   :  { %v1634_v25 = vmax.f32 %v1632_v23, %v1633_v24 }
0x12fb   :  { %2339 = vpush %v1634_v25 }
0x132c   :  { %s2340_s10 = spop %2339 }
0x132d   :  { %v1636_v44 = vstv %s2340_s10 }
0x132e   :  { %v1637_v26 = vsub.f32 %v1613_v7, %v1636_v44  ;;  %v1638_v40 = vsub.f32 %v1618_v5, %v1636_v44 }
0x1330   :  { %v1639_v28 = vmul.f32 1.442695, %v1637_v26  ;;  %v1641_v29 = vmul.f32 1.442695, %v1638_v40 }
0x1332   :  { %2410 = vpow2.f32 %v1639_v28 }
0x1333   :  { %2412 = vpow2.f32 %v1641_v29 }
0x1334   :  { %2414 = vtanh.f32 %v1613_v7 }
0x1335   :  { %2416 = vtanh.f32 %v1618_v5 }
0x133c   :  { %v2411_v31 = vpop.eup %2410 }
0x133d   :  { %1645 = vperm.xlu1 %2354, %v2411_v31   ;;  %v2413_v33 = vpop.eup %2412 }
0x133e   :  { %v2355_v34 = vpack.i.bf16 %v2413_v33, %v2411_v31  ;;  %v2415_v38 = vpop.eup %2414 }
0x133f   :  { %v2417_v36 = vpop.eup %2416 }
0x1341   :  { %1650 = vperm.xlu1 %2354, %v2413_v33  }
0x1345   :  { %2356 = vrot.lane.b32.xlu1 %v2355_v34, %s2524_s16 }
0x13bc   :  { %v1646_v35 = vpop.permute.xlu1 %1645 }
0x13bd   :  { %v1653_v39 = vmul.f32 %v2415_v38, %v1646_v35 }
0x13bf   :  { %v1655_v41 = vmul.f32 %v1653_v39, %v2836_v0  ;;  %v2525_v0 = vmov 0  }
0x13c0   :  { %v1651_v10 = vpop.permute.xlu1 %1650  ;;  %2360 = vset.pattern.permute.xlu1 %v2525_v0  ;;  %2361 = vset.pattern.permute.xlu0 %v2525_v0 }
0x13c1   :  { %v1654_v16 = vmul.f32 %v2417_v36, %v1651_v10 }
0x13c3   :  { %v1656_v27 = vmul.f32 %v1654_v16, %v2842_v1  ;;  %v1818_v1 = vld [vmem:[%s3119_s19] sm:$0xff] }
0x13c4   :  { %v2357_v37 = vpop.permute.xlu1 %2356  ;;  %v2326_v58 = vpack.c.bf16 %v1819_v47, %v1818_v1 }
0x13c5   :  { %v2320_v18 = vpack.c.bf16 %v1656_v27, %v1655_v41  ;;  %v2359_v45 = vunpack.i.h.bf16 %v2357_v37  ;;  %v2358_v42 = vunpack.i.l.bf16 %v2357_v37 }
0x13c7   :  { %2321 = vmatpush3.bf16.msra.mxu1 %v2320_v18  ;;  %v2323_v46 = vpack.c.bf16 %v2359_v45, %v2358_v42 }
0x13c8   :  { %2322 = vmatprep.subr.bf16.mxu1 %v2522_v51 }
0x13ca   :  { %2128 = vmatmul.mubr.msk.f32.vlgmr.msra.gmra.mrb[16].mxu1 %vm110_vm0, %v1657_v43 }
0x13cb   :  { %2324 = vmatpush3.bf16.msra.mxu1 %v2323_v46  ;;  %2134 = vmatprep.mubr.msk.f32.mxu1 %vm2520_vm5, %v2519_v12 }
0x13cc   :  { %2325 = vmatprep.subr.bf16.mxu1 %v2522_v51 }
0x13ce   :  { %2135 = vmatmul.mubr.msk.f32.vlgmr.msra.gmra.mrb[18].mxu1 %vm110_vm0, %v1657_v43 }
0x13cf   :  { %2145 = vmatprep.mubr.msk.f32.mxu1 %vm2520_vm5, %v2519_v12  ;;  %v1821_v12 = vld [vmem:[%s3119_s19 + $0x18] sm:$0xff]  ;;  %2327 = vmatpush3.bf16.msra.mxu1 %v2326_v58  ;;  %s2526_s19 = smov [#allocation9]  }
0x13d0   :  { %v2329_v48 = vpack.c.bf16 %v1821_v12, %v1820_v57  ;;  %2328 = vmatprep.subr.bf16.mxu1 %v2522_v51  ;;  %s1984_s27 = sshll.u32 %s2526_s19, 4  ;;  %s1985_s27 = int_to_ptr.vmem [resolvable:$true] %s1984_s27 }
0x13d1   :  { %s2486_s26 = scalar_lea.vmem %s1985_s27, 32  ;;  %p2491_p11 = scmp.lt.s32.totalorder %s1985_s27, %s1985_s27 }
0x13d2   :  { %p2487_p10 = scmp.ne.s32.totalorder %s1985_s27, %s2486_s26  ;;  %p2492_p12 = scmp.lt.s32.totalorder %s2486_s26, %s2486_s26 }
0x13d3   :  { %2330 = vmatpush3.bf16.msra.mxu1 %v2329_v48 }
0x13d4   :  { %p2493_p13 = por %p2492_p12, %p2491_p11 }
0x13d6   :  { %p2494_p0 = pnand %p2493_p13, %p2487_p10 }
0x149d   :  { %v1727_v49 = vpop.f32.mrb[16].mxu1 }
0x149e   :  { %v2129_v50 = vpop.f32.mrb[17].mxu1 }
0x14a1   :  { %v1803_v52 = vpop.f32.mrb[18].mxu1 }
0x14a2   :  { %2418 = vrcp.f32 %v1803_v52  ;;  %v2136_v53 = vpop.f32.mrb[19].mxu1 }
0x14ac   :  { %v2419_v54 = vpop.eup %2418 }
0x14ad   :  { %1810 = vperm.xlu1 %2360, %v2419_v54  }
0x152c   :  { %v1811_v55 = vpop.permute.xlu1 %1810 }
0x152d   :  { %v1813_v56 = vmul.f32 %v1811_v55, %v1727_v49 }
0x152f   :  { %2146 = vmatmul.mubr.msk.f32.vlgmr.msra.gmra.mrb[20].mxu1 %vm571_vm8, %v1813_v56 }
0x1602   :  { %v1891_v60 = vpop.f32.mrb[20].mxu1 }
0x1603   :  { %v1965_v51 = vadd.f32 %v3055_v14, %v1891_v60  ;;  %v2147_v30 = vpop.f32.mrb[21].mxu1 }
0x1605   :  { %v1975_v8 = vadd.f32 %v2032_v61, %v1965_v51 }
0x1607   :  { %1977 = vst.msk [vmem:[#allocation9] sm:$0x3] %vm1976_vm15, %v1975_v8 }
0x1608   :  { %2497 = shalt.err (!%p2494_p0)
}
0x1609   :  { %s2498_s20 = scalar_lea.hbm %s3121_s21, 32 }
0x160a   :  { %p2499_p1 = scmp.ne.s32.totalorder %s3121_s21, %s2498_s20  ;;  %p2502_p2 = scmp.lt.u32.totalorder %s2498_s20, %s3121_s21 }
0x160c   :  { %p2504_p3 = pnand %p2502_p2, %p2499_p1 }
0x160e   :  { %2507 = shalt.err (!%p2504_p3)
}
0x160f   :  { %1987 = dma.vmem_to_hbm [thread:$0]  %s1985_s27, 32, %s3121_s21, [#allocation5]  }
0x1610   :  { %2512 = dma.done.wait [#allocation5], 32  }
0x1611   :  { %2513 = vsyncadd [#allocation5], 4294967264 }
0x1612   :  { %1991 = vsyncpa [#allocation4], 1 }
0x1613   :  { %1992 = vsyncpa [#allocation7], 1 }
0x1614   :  { %1993 = vsyncpa [#allocation5], 1 }

</bundles_post_ra>
